<compile_context>
chip_gen: v7x
topology: tpu7x:2x2x1
jax: 0.10.0
libtpu: 0.0.40
codegen_flags: <defaults>
</compile_context>

<pallas_src>
import numpy as np
import jax
import jax.numpy as jnp
from jax import lax
from jax.experimental import pallas as pl
from jax.experimental.pallas import tpu as pltpu

NUM_CLASSES = 11


# ----------------------------------------------------------------------------
# Pallas kernel: one grid step == one (batch tile, time block) of the 2-layer LSTM.
# Hidden / cell states live in VMEM scratch and persist across the time axis.
# ----------------------------------------------------------------------------
def seq2seq_kernel(
    x_ref,        # [Tblk, Bt, D]   time-major input block
    w_ih1_ref,    # [D, 4H]         layer-1 input->gates (fused, gate order i,f,g,o)
    w_hh1_ref,    # [H, 4H]         layer-1 hidden->gates
    b1_ref,       # [1, 4H]         layer-1 gate biases (b_ih + b_hh)
    w_ih2_ref,    # [H, 4H]         layer-2 input->gates
    w_hh2_ref,    # [H, 4H]         layer-2 hidden->gates
    b2_ref,       # [1, 4H]         layer-2 gate biases
    out_ref,      # [Tblk, Bt, H]   layer-2 hidden states (unmasked)
    h1_ref, c1_ref, h2_ref, c2_ref,  # VMEM scratch [Bt, H] each
):
    t_blk = pl.program_id(1)

    @pl.when(t_blk == 0)
    def _init():
        h1_ref[...] = jnp.zeros_like(h1_ref)
        c1_ref[...] = jnp.zeros_like(c1_ref)
        h2_ref[...] = jnp.zeros_like(h2_ref)
        c2_ref[...] = jnp.zeros_like(c2_ref)

    H = h1_ref.shape[-1]
    t_block = x_ref.shape[0]

    # Hoist weight/bias loads out of the inner time loop (loaded once per grid step).
    w_ih1 = w_ih1_ref[...]; w_hh1 = w_hh1_ref[...]; b1 = b1_ref[...]
    w_ih2 = w_ih2_ref[...]; w_hh2 = w_hh2_ref[...]; b2 = b2_ref[...]

    def lstm_cell(x, h, c, w_ih, w_hh, b):
        # One fused [*, 4H] matmul per operand; PyTorch gate order i, f, g, o.
        gates = (jnp.dot(x, w_ih, preferred_element_type=jnp.float32)
                 + jnp.dot(h, w_hh, preferred_element_type=jnp.float32)
                 + b)                                            # [Bt, 4H]
        i = jax.nn.sigmoid(gates[:, 0 * H:1 * H])
        f = jax.nn.sigmoid(gates[:, 1 * H:2 * H])
        g = jnp.tanh(gates[:, 2 * H:3 * H])
        o = jax.nn.sigmoid(gates[:, 3 * H:4 * H])
        c_new = f * c + i * g
        h_new = o * jnp.tanh(c_new)
        return h_new, c_new

    def step(t, carry):
        h1, c1, h2, c2 = carry
        x_t = x_ref[t]                                           # [Bt, D]
        # Layer 1
        h1, c1 = lstm_cell(x_t, h1, c1, w_ih1, w_hh1, b1)
        # Layer 2 (input = layer-1 hidden; inter-layer dropout is inference no-op)
        h2, c2 = lstm_cell(h1, h2, c2, w_ih2, w_hh2, b2)
        out_ref[t] = h2.astype(out_ref.dtype)
        return (h1, c1, h2, c2)

    carry = (h1_ref[...], c1_ref[...], h2_ref[...], c2_ref[...])
    carry = lax.fori_loop(0, t_block, step, carry, unroll=True)
    h1_ref[...], c1_ref[...], h2_ref[...], c2_ref[...] = carry


# ----------------------------------------------------------------------------
# Wrapper: batch-first in / batch-first out (like the PyTorch module).
# Masking (pack/pad semantics) + fc_2 run as one fused XLA epilogue outside the
# kernel so the in-kernel stores stay lane-dense in H.
# ----------------------------------------------------------------------------
def seq2seq_forward(padded_sequence, input_lengths, params, *, t_block=8, b_tile=8):
    x = padded_sequence.astype(jnp.float32)     # [B, T, D]
    B, T, D = x.shape
    H = params["w_hh1"].shape[0]

    Bp = -(-B // b_tile) * b_tile               # pad batch to sublane multiple
    Tp = -(-T // t_block) * t_block             # pad time to a whole number of blocks

    x_p = jnp.pad(x, ((0, Bp - B), (0, Tp - T), (0, 0)))
    x_tm = jnp.transpose(x_p, (1, 0, 2))        # [Tp, Bp, D] time-major

    nb = Bp // b_tile
    nt = Tp // t_block

    def wspec(arr):                             # full-array, constant-index weight spec
        return pl.BlockSpec(arr.shape, lambda b, t: (0, 0))

    hs_tm = pl.pallas_call(
        seq2seq_kernel,
        out_shape=jax.ShapeDtypeStruct((Tp, Bp, H), jnp.float32),
        grid_spec=pltpu.PrefetchScalarGridSpec(
            num_scalar_prefetch=0,
            grid=(nb, nt),
            in_specs=[
                pl.BlockSpec((t_block, b_tile, D), lambda b, t: (t, b, 0)),
                wspec(params["w_ih1"]),
                wspec(params["w_hh1"]),
                wspec(params["b1"]),
                wspec(params["w_ih2"]),
                wspec(params["w_hh2"]),
                wspec(params["b2"]),
            ],
            out_specs=pl.BlockSpec((t_block, b_tile, H), lambda b, t: (t, b, 0)),
            scratch_shapes=[pltpu.VMEM((b_tile, H), jnp.float32) for _ in range(4)],
        ),
        compiler_params=pltpu.CompilerParams(
            # batch tiles are independent (megacore-shardable); time is sequential
            dimension_semantics=("parallel", "arbitrary"),
        ),
    )(
        x_tm,
        params["w_ih1"], params["w_hh1"], params["b1"],
        params["w_ih2"], params["w_hh2"], params["b2"],
    )

    hs = jnp.transpose(hs_tm, (1, 0, 2))[:B, :T]                       # [B, T, H]
    # pad_packed_sequence: outputs at t >= length[b] are zero, so fc_2 there = bias.
    mask = (jnp.arange(T)[None, :] < input_lengths[:, None]).astype(hs.dtype)[:, :, None]
    hs = hs * mask
    return hs @ params["w_fc2"] + params["b_fc2"]                      # [B, T, 11]


# ----------------------------------------------------------------------------
# Pure-JAX reference (lax.scan) for correctness checking.
# ----------------------------------------------------------------------------
def seq2seq_reference(x, lengths, params):
    B, T, D = x.shape
    H = params["w_hh1"].shape[0]

    def lstm(xi, h, c, w_ih, w_hh, b):
        gates = xi @ w_ih + h @ w_hh + b
        i = jax.nn.sigmoid(gates[:, 0 * H:1 * H])
        f = jax.nn.sigmoid(gates[:, 1 * H:2 * H])
        g = jnp.tanh(gates[:, 2 * H:3 * H])
        o = jax.nn.sigmoid(gates[:, 3 * H:4 * H])
        c_new = f * c + i * g
        return o * jnp.tanh(c_new), c_new

    def cell(carry, x_t):
        h1, c1, h2, c2 = carry
        h1n, c1n = lstm(x_t, h1, c1, params["w_ih1"], params["w_hh1"], params["b1"])
        h2n, c2n = lstm(h1n, h2, c2, params["w_ih2"], params["w_hh2"], params["b2"])
        return (h1n, c1n, h2n, c2n), h2n

    init = tuple(jnp.zeros((B, H), jnp.float32) for _ in range(4))
    _, hs = lax.scan(cell, init, jnp.transpose(x, (1, 0, 2)))   # [T, B, H]
    hs = jnp.transpose(hs, (1, 0, 2))                           # [B, T, H]
    mask = (jnp.arange(T)[None, :] < lengths[:, None]).astype(jnp.float32)[:, :, None]
    hs = hs * mask
    return hs @ params["w_fc2"] + params["b_fc2"]


# ----------------------------------------------------------------------------
# Deterministic synthetic parameters (fused-gate layout, gate order i,f,g,o).
# ----------------------------------------------------------------------------
def init_params(key, input_size, hidden_size):
    H = hidden_size
    scale = 1.0 / np.sqrt(H)
    ks = jax.random.split(key, 8)

    def u(k, shape):
        return jax.random.uniform(k, shape, jnp.float32, -scale, scale)

    return {
        "w_ih1": u(ks[0], (input_size, 4 * H)),   # layer-1 W_ih fused & transposed
        "w_hh1": u(ks[1], (H, 4 * H)),
        "b1":    u(ks[2], (1, 4 * H)),            # b_ih + b_hh combined
        "w_ih2": u(ks[3], (H, 4 * H)),
        "w_hh2": u(ks[4], (H, 4 * H)),
        "b2":    u(ks[5], (1, 4 * H)),
        "w_fc2": u(ks[6], (H, NUM_CLASSES)),      # fc_2.weight.T
        "b_fc2": u(ks[7], (1, NUM_CLASSES)),
    }


if __name__ == "__main__":
    # Small shapes consistent with the module's forward:
    #   padded_sequence [B, T, input_size], input_lengths [B] (sorted descending).
    B, T, INPUT_SIZE, HIDDEN = 4, 8, 16, 32

    key = jax.random.PRNGKey(0)
    k_x, k_p = jax.random.split(key)

    params = init_params(k_p, INPUT_SIZE, HIDDEN)
    lengths = jnp.array([8, 6, 5, 3], dtype=jnp.int32)        # max == T (pack_padded: sorted)
    x = jax.random.normal(k_x, (B, T, INPUT_SIZE), jnp.float32)
    # zero out padded frames like a real padded batch
    pad_mask = (jnp.arange(T)[None, :] < lengths[:, None]).astype(jnp.float32)[:, :, None]
    x = x * pad_mask

    out = jax.block_until_ready(seq2seq_forward(x, lengths, params))
    ref = jax.block_until_ready(seq2seq_reference(x, lengths, params))

    assert out.shape == (B, T, NUM_CLASSES), out.shape
    err = float(np.max(np.abs(np.asarray(out) - np.asarray(ref))))
    assert np.allclose(np.asarray(out), np.asarray(ref), atol=1e-3, rtol=1e-3), err

    print("KERNEL_OK")
</pallas_src>

<mosaic_0001>
module attributes {stable_mosaic.version = 11 : i64} {
  func.func @seq2seq_kernel(%arg0: i32, %arg1: i32, %arg2: memref<8x8x16xf32, #tpu.memory_space<vmem>>, %arg3: memref<16x128xf32, #tpu.memory_space<vmem>>, %arg4: memref<32x128xf32, #tpu.memory_space<vmem>>, %arg5: memref<1x128xf32, #tpu.memory_space<vmem>>, %arg6: memref<32x128xf32, #tpu.memory_space<vmem>>, %arg7: memref<32x128xf32, #tpu.memory_space<vmem>>, %arg8: memref<1x128xf32, #tpu.memory_space<vmem>>, %arg9: memref<8x8x32xf32, #tpu.memory_space<vmem>>, %arg10: memref<8x32xf32, #tpu.memory_space<vmem>>, %arg11: memref<8x32xf32, #tpu.memory_space<vmem>>, %arg12: memref<8x32xf32, #tpu.memory_space<vmem>>, %arg13: memref<8x32xf32, #tpu.memory_space<vmem>>) attributes {dimension_semantics = [#tpu.dimension_semantics<parallel>, #tpu.dimension_semantics<arbitrary>], iteration_bounds = array<i64: 1, 1>, scalar_prefetch = 0 : i64, scratch_operands = 4 : i64, tpu.core_type = #tpu.core_type<tc>, window_params = [{transform_indices = @transform_0, window_bounds = array<i64: 8, 8, 16>}, {pipeline_mode = #tpu.pipeline_mode<synchronous>, transform_indices = @transform_1, window_bounds = array<i64: 16, 128>}, {pipeline_mode = #tpu.pipeline_mode<synchronous>, transform_indices = @transform_2, window_bounds = array<i64: 32, 128>}, {pipeline_mode = #tpu.pipeline_mode<synchronous>, transform_indices = @transform_3, window_bounds = array<i64: 1, 128>}, {pipeline_mode = #tpu.pipeline_mode<synchronous>, transform_indices = @transform_4, window_bounds = array<i64: 32, 128>}, {pipeline_mode = #tpu.pipeline_mode<synchronous>, transform_indices = @transform_5, window_bounds = array<i64: 32, 128>}, {pipeline_mode = #tpu.pipeline_mode<synchronous>, transform_indices = @transform_6, window_bounds = array<i64: 1, 128>}, {transform_indices = @transform_7, window_bounds = array<i64: 8, 8, 32>}]} {
    %c0_i32 = arith.constant 0 : i32
    %0 = arith.cmpi eq, %arg1, %c0_i32 : i32
    %1 = arith.extui %0 : i1 to i32
    %c0_i32_0 = arith.constant 0 : i32
    %2 = arith.cmpi ne, %1, %c0_i32_0 : i32
    scf.if %2 {
      %cst_140 = arith.constant 0.000000e+00 : f32
      %553 = vector.broadcast %cst_140 : f32 to vector<8x32xf32>
      %c0_141 = arith.constant 0 : index
      %c0_142 = arith.constant 0 : index
      %554 = vector.load %arg10[%c0_141, %c0_142] : memref<8x32xf32, #tpu.memory_space<vmem>>, vector<8x32xf32>
      tpu.vector_store %arg10[%c0_141, %c0_142], %553 {strides = array<i32>} : memref<8x32xf32, #tpu.memory_space<vmem>>, vector<8x32xf32>,
      %cst_143 = arith.constant 0.000000e+00 : f32
      %555 = vector.broadcast %cst_143 : f32 to vector<8x32xf32>
      %c0_144 = arith.constant 0 : index
      %c0_145 = arith.constant 0 : index
      %556 = vector.load %arg11[%c0_144, %c0_145] : memref<8x32xf32, #tpu.memory_space<vmem>>, vector<8x32xf32>
      tpu.vector_store %arg11[%c0_144, %c0_145], %555 {strides = array<i32>} : memref<8x32xf32, #tpu.memory_space<vmem>>, vector<8x32xf32>,
      %cst_146 = arith.constant 0.000000e+00 : f32
      %557 = vector.broadcast %cst_146 : f32 to vector<8x32xf32>
      %c0_147 = arith.constant 0 : index
      %c0_148 = arith.constant 0 : index
      %558 = vector.load %arg12[%c0_147, %c0_148] : memref<8x32xf32, #tpu.memory_space<vmem>>, vector<8x32xf32>
      tpu.vector_store %arg12[%c0_147, %c0_148], %557 {strides = array<i32>} : memref<8x32xf32, #tpu.memory_space<vmem>>, vector<8x32xf32>,
      %cst_149 = arith.constant 0.000000e+00 : f32
      %559 = vector.broadcast %cst_149 : f32 to vector<8x32xf32>
      %c0_150 = arith.constant 0 : index
      %c0_151 = arith.constant 0 : index
      %560 = vector.load %arg13[%c0_150, %c0_151] : memref<8x32xf32, #tpu.memory_space<vmem>>, vector<8x32xf32>
      tpu.vector_store %arg13[%c0_150, %c0_151], %559 {strides = array<i32>} : memref<8x32xf32, #tpu.memory_space<vmem>>, vector<8x32xf32>,
    } else {
    }
    %c0 = arith.constant 0 : index
    %c0_1 = arith.constant 0 : index
    %3 = vector.load %arg3[%c0, %c0_1] : memref<16x128xf32, #tpu.memory_space<vmem>>, vector<16x128xf32>
    %c0_2 = arith.constant 0 : index
    %c0_3 = arith.constant 0 : index
    %4 = vector.load %arg4[%c0_2, %c0_3] : memref<32x128xf32, #tpu.memory_space<vmem>>, vector<32x128xf32>
    %c0_4 = arith.constant 0 : index
    %c0_5 = arith.constant 0 : index
    %5 = vector.load %arg5[%c0_4, %c0_5] : memref<1x128xf32, #tpu.memory_space<vmem>>, vector<1x128xf32>
    %c0_6 = arith.constant 0 : index
    %c0_7 = arith.constant 0 : index
    %6 = vector.load %arg6[%c0_6, %c0_7] : memref<32x128xf32, #tpu.memory_space<vmem>>, vector<32x128xf32>
    %c0_8 = arith.constant 0 : index
    %c0_9 = arith.constant 0 : index
    %7 = vector.load %arg7[%c0_8, %c0_9] : memref<32x128xf32, #tpu.memory_space<vmem>>, vector<32x128xf32>
    %c0_10 = arith.constant 0 : index
    %c0_11 = arith.constant 0 : index
    %8 = vector.load %arg8[%c0_10, %c0_11] : memref<1x128xf32, #tpu.memory_space<vmem>>, vector<1x128xf32>
    %c0_12 = arith.constant 0 : index
    %c0_13 = arith.constant 0 : index
    %9 = vector.load %arg10[%c0_12, %c0_13] : memref<8x32xf32, #tpu.memory_space<vmem>>, vector<8x32xf32>
    %c0_14 = arith.constant 0 : index
    %c0_15 = arith.constant 0 : index
    %10 = vector.load %arg11[%c0_14, %c0_15] : memref<8x32xf32, #tpu.memory_space<vmem>>, vector<8x32xf32>
    %c0_16 = arith.constant 0 : index
    %c0_17 = arith.constant 0 : index
    %11 = vector.load %arg12[%c0_16, %c0_17] : memref<8x32xf32, #tpu.memory_space<vmem>>, vector<8x32xf32>
    %c0_18 = arith.constant 0 : index
    %c0_19 = arith.constant 0 : index
    %12 = vector.load %arg13[%c0_18, %c0_19] : memref<8x32xf32, #tpu.memory_space<vmem>>, vector<8x32xf32>
    %c0_i32_20 = arith.constant 0 : i32
    %13 = arith.index_cast %c0_i32_20 : i32 to index
    %c0_21 = arith.constant 0 : index
    %c0_22 = arith.constant 0 : index
    %14 = vector.load %arg2[%13, %c0_21, %c0_22] : memref<8x8x16xf32, #tpu.memory_space<vmem>>, vector<1x8x16xf32>
    %15 = vector.shape_cast %14 : vector<1x8x16xf32> to vector<8x16xf32>
    %cst = arith.constant dense<0.000000e+00> : vector<8x128xf32>
    %16 = tpu.matmul %15, %3, %cst {dimension_numbers = #tpu.dot_dimension_numbers<[1], [0], [0], [1], [0, 0, 1, 1], [], []>} : vector<8x16xf32>, vector<16x128xf32>, vector<8x128xf32> -> vector<8x128xf32>
    %cst_23 = arith.constant dense<0.000000e+00> : vector<8x128xf32>
    %17 = tpu.matmul %9, %4, %cst_23 {dimension_numbers = #tpu.dot_dimension_numbers<[1], [0], [0], [1], [0, 0, 1, 1], [], []>} : vector<8x32xf32>, vector<32x128xf32>, vector<8x128xf32> -> vector<8x128xf32>
    %18 = arith.addf %16, %17 : vector<8x128xf32>
    %19 = vector.broadcast %5 : vector<1x128xf32> to vector<8x128xf32>
    %20 = arith.addf %18, %19 : vector<8x128xf32>
    %21 = vector.extract_strided_slice %20 {offsets = [0, 0], sizes = [8, 32], strides = [1, 1]} : vector<8x128xf32> to vector<8x32xf32>
    %22 = arith.negf %21 : vector<8x32xf32>
    %23 = math.exp %22 : vector<8x32xf32>
    %cst_24 = arith.constant 1.000000e+00 : f32
    %24 = vector.broadcast %cst_24 : f32 to vector<8x32xf32>
    %25 = arith.addf %24, %23 : vector<8x32xf32>
    %26 = arith.divf %24, %25 : vector<8x32xf32>
    %27 = vector.extract_strided_slice %20 {offsets = [0, 32], sizes = [8, 32], strides = [1, 1]} : vector<8x128xf32> to vector<8x32xf32>
    %28 = arith.negf %27 : vector<8x32xf32>
    %29 = math.exp %28 : vector<8x32xf32>
    %cst_25 = arith.constant 1.000000e+00 : f32
    %30 = vector.broadcast %cst_25 : f32 to vector<8x32xf32>
    %31 = arith.addf %30, %29 : vector<8x32xf32>
    %32 = arith.divf %30, %31 : vector<8x32xf32>
    %33 = vector.extract_strided_slice %20 {offsets = [0, 64], sizes = [8, 32], strides = [1, 1]} : vector<8x128xf32> to vector<8x32xf32>
    %34 = math.tanh %33 : vector<8x32xf32>
    %35 = vector.extract_strided_slice %20 {offsets = [0, 96], sizes = [8, 32], strides = [1, 1]} : vector<8x128xf32> to vector<8x32xf32>
    %36 = arith.negf %35 : vector<8x32xf32>
    %37 = math.exp %36 : vector<8x32xf32>
    %cst_26 = arith.constant 1.000000e+00 : f32
    %38 = vector.broadcast %cst_26 : f32 to vector<8x32xf32>
    %39 = arith.addf %38, %37 : vector<8x32xf32>
    %40 = arith.divf %38, %39 : vector<8x32xf32>
    %41 = arith.mulf %32, %10 : vector<8x32xf32>
    %42 = arith.mulf %26, %34 : vector<8x32xf32>
    %43 = arith.addf %41, %42 : vector<8x32xf32>
    %44 = math.tanh %43 : vector<8x32xf32>
    %45 = arith.mulf %40, %44 : vector<8x32xf32>
    %cst_27 = arith.constant dense<0.000000e+00> : vector<8x128xf32>
    %46 = tpu.matmul %45, %6, %cst_27 {dimension_numbers = #tpu.dot_dimension_numbers<[1], [0], [0], [1], [0, 0, 1, 1], [], []>} : vector<8x32xf32>, vector<32x128xf32>, vector<8x128xf32> -> vector<8x128xf32>
    %cst_28 = arith.constant dense<0.000000e+00> : vector<8x128xf32>
    %47 = tpu.matmul %11, %7, %cst_28 {dimension_numbers = #tpu.dot_dimension_numbers<[1], [0], [0], [1], [0, 0, 1, 1], [], []>} : vector<8x32xf32>, vector<32x128xf32>, vector<8x128xf32> -> vector<8x128xf32>
    %48 = arith.addf %46, %47 : vector<8x128xf32>
    %49 = vector.broadcast %8 : vector<1x128xf32> to vector<8x128xf32>
    %50 = arith.addf %48, %49 : vector<8x128xf32>
    %51 = vector.extract_strided_slice %50 {offsets = [0, 0], sizes = [8, 32], strides = [1, 1]} : vector<8x128xf32> to vector<8x32xf32>
    %52 = arith.negf %51 : vector<8x32xf32>
    %53 = math.exp %52 : vector<8x32xf32>
    %cst_29 = arith.constant 1.000000e+00 : f32
    %54 = vector.broadcast %cst_29 : f32 to vector<8x32xf32>
    %55 = arith.addf %54, %53 : vector<8x32xf32>
    %56 = arith.divf %54, %55 : vector<8x32xf32>
    %57 = vector.extract_strided_slice %50 {offsets = [0, 32], sizes = [8, 32], strides = [1, 1]} : vector<8x128xf32> to vector<8x32xf32>
    %58 = arith.negf %57 : vector<8x32xf32>
    %59 = math.exp %58 : vector<8x32xf32>
    %cst_30 = arith.constant 1.000000e+00 : f32
    %60 = vector.broadcast %cst_30 : f32 to vector<8x32xf32>
    %61 = arith.addf %60, %59 : vector<8x32xf32>
    %62 = arith.divf %60, %61 : vector<8x32xf32>
    %63 = vector.extract_strided_slice %50 {offsets = [0, 64], sizes = [8, 32], strides = [1, 1]} : vector<8x128xf32> to vector<8x32xf32>
    %64 = math.tanh %63 : vector<8x32xf32>
    %65 = vector.extract_strided_slice %50 {offsets = [0, 96], sizes = [8, 32], strides = [1, 1]} : vector<8x128xf32> to vector<8x32xf32>
    %66 = arith.negf %65 : vector<8x32xf32>
    %67 = math.exp %66 : vector<8x32xf32>
    %cst_31 = arith.constant 1.000000e+00 : f32
    %68 = vector.broadcast %cst_31 : f32 to vector<8x32xf32>
    %69 = arith.addf %68, %67 : vector<8x32xf32>
    %70 = arith.divf %68, %69 : vector<8x32xf32>
    %71 = arith.mulf %62, %12 : vector<8x32xf32>
    %72 = arith.mulf %56, %64 : vector<8x32xf32>
    %73 = arith.addf %71, %72 : vector<8x32xf32>
    %74 = math.tanh %73 : vector<8x32xf32>
    %75 = arith.mulf %70, %74 : vector<8x32xf32>
    %76 = arith.index_cast %c0_i32_20 : i32 to index
    %c0_32 = arith.constant 0 : index
    %c0_33 = arith.constant 0 : index
    %77 = vector.load %arg9[%76, %c0_32, %c0_33] : memref<8x8x32xf32, #tpu.memory_space<vmem>>, vector<1x8x32xf32>
    %78 = vector.shape_cast %77 : vector<1x8x32xf32> to vector<8x32xf32>
    %79 = vector.shape_cast %75 : vector<8x32xf32> to vector<1x8x32xf32>
    tpu.vector_store %arg9[%76, %c0_32, %c0_33], %79 {strides = array<i32>} : memref<8x8x32xf32, #tpu.memory_space<vmem>>, vector<1x8x32xf32>,
    %c1_i32 = arith.constant 1 : i32
    %80 = arith.index_cast %c1_i32 : i32 to index
    %c0_34 = arith.constant 0 : index
    %c0_35 = arith.constant 0 : index
    %81 = vector.load %arg2[%80, %c0_34, %c0_35] : memref<8x8x16xf32, #tpu.memory_space<vmem>>, vector<1x8x16xf32>
    %82 = vector.shape_cast %81 : vector<1x8x16xf32> to vector<8x16xf32>
    %cst_36 = arith.constant dense<0.000000e+00> : vector<8x128xf32>
    %83 = tpu.matmul %82, %3, %cst_36 {dimension_numbers = #tpu.dot_dimension_numbers<[1], [0], [0], [1], [0, 0, 1, 1], [], []>} : vector<8x16xf32>, vector<16x128xf32>, vector<8x128xf32> -> vector<8x128xf32>
    %cst_37 = arith.constant dense<0.000000e+00> : vector<8x128xf32>
    %84 = tpu.matmul %45, %4, %cst_37 {dimension_numbers = #tpu.dot_dimension_numbers<[1], [0], [0], [1], [0, 0, 1, 1], [], []>} : vector<8x32xf32>, vector<32x128xf32>, vector<8x128xf32> -> vector<8x128xf32>
    %85 = arith.addf %83, %84 : vector<8x128xf32>
    %86 = vector.broadcast %5 : vector<1x128xf32> to vector<8x128xf32>
    %87 = arith.addf %85, %86 : vector<8x128xf32>
    %88 = vector.extract_strided_slice %87 {offsets = [0, 0], sizes = [8, 32], strides = [1, 1]} : vector<8x128xf32> to vector<8x32xf32>
    %89 = arith.negf %88 : vector<8x32xf32>
    %90 = math.exp %89 : vector<8x32xf32>
    %cst_38 = arith.constant 1.000000e+00 : f32
    %91 = vector.broadcast %cst_38 : f32 to vector<8x32xf32>
    %92 = arith.addf %91, %90 : vector<8x32xf32>
    %93 = arith.divf %91, %92 : vector<8x32xf32>
    %94 = vector.extract_strided_slice %87 {offsets = [0, 32], sizes = [8, 32], strides = [1, 1]} : vector<8x128xf32> to vector<8x32xf32>
    %95 = arith.negf %94 : vector<8x32xf32>
    %96 = math.exp %95 : vector<8x32xf32>
    %cst_39 = arith.constant 1.000000e+00 : f32
    %97 = vector.broadcast %cst_39 : f32 to vector<8x32xf32>
    %98 = arith.addf %97, %96 : vector<8x32xf32>
    %99 = arith.divf %97, %98 : vector<8x32xf32>
    %100 = vector.extract_strided_slice %87 {offsets = [0, 64], sizes = [8, 32], strides = [1, 1]} : vector<8x128xf32> to vector<8x32xf32>
    %101 = math.tanh %100 : vector<8x32xf32>
    %102 = vector.extract_strided_slice %87 {offsets = [0, 96], sizes = [8, 32], strides = [1, 1]} : vector<8x128xf32> to vector<8x32xf32>
    %103 = arith.negf %102 : vector<8x32xf32>
    %104 = math.exp %103 : vector<8x32xf32>
    %cst_40 = arith.constant 1.000000e+00 : f32
    %105 = vector.broadcast %cst_40 : f32 to vector<8x32xf32>
    %106 = arith.addf %105, %104 : vector<8x32xf32>
    %107 = arith.divf %105, %106 : vector<8x32xf32>
    %108 = arith.mulf %99, %43 : vector<8x32xf32>
    %109 = arith.mulf %93, %101 : vector<8x32xf32>
    %110 = arith.addf %108, %109 : vector<8x32xf32>
    %111 = math.tanh %110 : vector<8x32xf32>
    %112 = arith.mulf %107, %111 : vector<8x32xf32>
    %cst_41 = arith.constant dense<0.000000e+00> : vector<8x128xf32>
    %113 = tpu.matmul %112, %6, %cst_41 {dimension_numbers = #tpu.dot_dimension_numbers<[1], [0], [0], [1], [0, 0, 1, 1], [], []>} : vector<8x32xf32>, vector<32x128xf32>, vector<8x128xf32> -> vector<8x128xf32>
    %cst_42 = arith.constant dense<0.000000e+00> : vector<8x128xf32>
    %114 = tpu.matmul %75, %7, %cst_42 {dimension_numbers = #tpu.dot_dimension_numbers<[1], [0], [0], [1], [0, 0, 1, 1], [], []>} : vector<8x32xf32>, vector<32x128xf32>, vector<8x128xf32> -> vector<8x128xf32>
    %115 = arith.addf %113, %114 : vector<8x128xf32>
    %116 = vector.broadcast %8 : vector<1x128xf32> to vector<8x128xf32>
    %117 = arith.addf %115, %116 : vector<8x128xf32>
    %118 = vector.extract_strided_slice %117 {offsets = [0, 0], sizes = [8, 32], strides = [1, 1]} : vector<8x128xf32> to vector<8x32xf32>
    %119 = arith.negf %118 : vector<8x32xf32>
    %120 = math.exp %119 : vector<8x32xf32>
    %cst_43 = arith.constant 1.000000e+00 : f32
    %121 = vector.broadcast %cst_43 : f32 to vector<8x32xf32>
    %122 = arith.addf %121, %120 : vector<8x32xf32>
    %123 = arith.divf %121, %122 : vector<8x32xf32>
    %124 = vector.extract_strided_slice %117 {offsets = [0, 32], sizes = [8, 32], strides = [1, 1]} : vector<8x128xf32> to vector<8x32xf32>
    %125 = arith.negf %124 : vector<8x32xf32>
    %126 = math.exp %125 : vector<8x32xf32>
    %cst_44 = arith.constant 1.000000e+00 : f32
    %127 = vector.broadcast %cst_44 : f32 to vector<8x32xf32>
    %128 = arith.addf %127, %126 : vector<8x32xf32>
    %129 = arith.divf %127, %128 : vector<8x32xf32>
    %130 = vector.extract_strided_slice %117 {offsets = [0, 64], sizes = [8, 32], strides = [1, 1]} : vector<8x128xf32> to vector<8x32xf32>
    %131 = math.tanh %130 : vector<8x32xf32>
    %132 = vector.extract_strided_slice %117 {offsets = [0, 96], sizes = [8, 32], strides = [1, 1]} : vector<8x128xf32> to vector<8x32xf32>
    %133 = arith.negf %132 : vector<8x32xf32>
    %134 = math.exp %133 : vector<8x32xf32>
    %cst_45 = arith.constant 1.000000e+00 : f32
    %135 = vector.broadcast %cst_45 : f32 to vector<8x32xf32>
    %136 = arith.addf %135, %134 : vector<8x32xf32>
    %137 = arith.divf %135, %136 : vector<8x32xf32>
    %138 = arith.mulf %129, %73 : vector<8x32xf32>
    %139 = arith.mulf %123, %131 : vector<8x32xf32>
    %140 = arith.addf %138, %139 : vector<8x32xf32>
    %141 = math.tanh %140 : vector<8x32xf32>
    %142 = arith.mulf %137, %141 : vector<8x32xf32>
    %143 = arith.index_cast %c1_i32 : i32 to index
    %c0_46 = arith.constant 0 : index
    %c0_47 = arith.constant 0 : index
    %144 = vector.load %arg9[%143, %c0_46, %c0_47] : memref<8x8x32xf32, #tpu.memory_space<vmem>>, vector<1x8x32xf32>
    %145 = vector.shape_cast %144 : vector<1x8x32xf32> to vector<8x32xf32>
    %146 = vector.shape_cast %142 : vector<8x32xf32> to vector<1x8x32xf32>
    tpu.vector_store %arg9[%143, %c0_46, %c0_47], %146 {strides = array<i32>} : memref<8x8x32xf32, #tpu.memory_space<vmem>>, vector<1x8x32xf32>,
    %c2_i32 = arith.constant 2 : i32
    %147 = arith.index_cast %c2_i32 : i32 to index
    %c0_48 = arith.constant 0 : index
    %c0_49 = arith.constant 0 : index
    %148 = vector.load %arg2[%147, %c0_48, %c0_49] : memref<8x8x16xf32, #tpu.memory_space<vmem>>, vector<1x8x16xf32>
    %149 = vector.shape_cast %148 : vector<1x8x16xf32> to vector<8x16xf32>
    %cst_50 = arith.constant dense<0.000000e+00> : vector<8x128xf32>
    %150 = tpu.matmul %149, %3, %cst_50 {dimension_numbers = #tpu.dot_dimension_numbers<[1], [0], [0], [1], [0, 0, 1, 1], [], []>} : vector<8x16xf32>, vector<16x128xf32>, vector<8x128xf32> -> vector<8x128xf32>
    %cst_51 = arith.constant dense<0.000000e+00> : vector<8x128xf32>
    %151 = tpu.matmul %112, %4, %cst_51 {dimension_numbers = #tpu.dot_dimension_numbers<[1], [0], [0], [1], [0, 0, 1, 1], [], []>} : vector<8x32xf32>, vector<32x128xf32>, vector<8x128xf32> -> vector<8x128xf32>
    %152 = arith.addf %150, %151 : vector<8x128xf32>
    %153 = vector.broadcast %5 : vector<1x128xf32> to vector<8x128xf32>
    %154 = arith.addf %152, %153 : vector<8x128xf32>
    %155 = vector.extract_strided_slice %154 {offsets = [0, 0], sizes = [8, 32], strides = [1, 1]} : vector<8x128xf32> to vector<8x32xf32>
    %156 = arith.negf %155 : vector<8x32xf32>
    %157 = math.exp %156 : vector<8x32xf32>
    %cst_52 = arith.constant 1.000000e+00 : f32
    %158 = vector.broadcast %cst_52 : f32 to vector<8x32xf32>
    %159 = arith.addf %158, %157 : vector<8x32xf32>
    %160 = arith.divf %158, %159 : vector<8x32xf32>
    %161 = vector.extract_strided_slice %154 {offsets = [0, 32], sizes = [8, 32], strides = [1, 1]} : vector<8x128xf32> to vector<8x32xf32>
    %162 = arith.negf %161 : vector<8x32xf32>
    %163 = math.exp %162 : vector<8x32xf32>
    %cst_53 = arith.constant 1.000000e+00 : f32
    %164 = vector.broadcast %cst_53 : f32 to vector<8x32xf32>
    %165 = arith.addf %164, %163 : vector<8x32xf32>
    %166 = arith.divf %164, %165 : vector<8x32xf32>
    %167 = vector.extract_strided_slice %154 {offsets = [0, 64], sizes = [8, 32], strides = [1, 1]} : vector<8x128xf32> to vector<8x32xf32>
    %168 = math.tanh %167 : vector<8x32xf32>
    %169 = vector.extract_strided_slice %154 {offsets = [0, 96], sizes = [8, 32], strides = [1, 1]} : vector<8x128xf32> to vector<8x32xf32>
    %170 = arith.negf %169 : vector<8x32xf32>
    %171 = math.exp %170 : vector<8x32xf32>
    %cst_54 = arith.constant 1.000000e+00 : f32
    %172 = vector.broadcast %cst_54 : f32 to vector<8x32xf32>
    %173 = arith.addf %172, %171 : vector<8x32xf32>
    %174 = arith.divf %172, %173 : vector<8x32xf32>
    %175 = arith.mulf %166, %110 : vector<8x32xf32>
    %176 = arith.mulf %160, %168 : vector<8x32xf32>
    %177 = arith.addf %175, %176 : vector<8x32xf32>
    %178 = math.tanh %177 : vector<8x32xf32>
    %179 = arith.mulf %174, %178 : vector<8x32xf32>
    %cst_55 = arith.constant dense<0.000000e+00> : vector<8x128xf32>
    %180 = tpu.matmul %179, %6, %cst_55 {dimension_numbers = #tpu.dot_dimension_numbers<[1], [0], [0], [1], [0, 0, 1, 1], [], []>} : vector<8x32xf32>, vector<32x128xf32>, vector<8x128xf32> -> vector<8x128xf32>
    %cst_56 = arith.constant dense<0.000000e+00> : vector<8x128xf32>
    %181 = tpu.matmul %142, %7, %cst_56 {dimension_numbers = #tpu.dot_dimension_numbers<[1], [0], [0], [1], [0, 0, 1, 1], [], []>} : vector<8x32xf32>, vector<32x128xf32>, vector<8x128xf32> -> vector<8x128xf32>
    %182 = arith.addf %180, %181 : vector<8x128xf32>
    %183 = vector.broadcast %8 : vector<1x128xf32> to vector<8x128xf32>
    %184 = arith.addf %182, %183 : vector<8x128xf32>
    %185 = vector.extract_strided_slice %184 {offsets = [0, 0], sizes = [8, 32], strides = [1, 1]} : vector<8x128xf32> to vector<8x32xf32>
    %186 = arith.negf %185 : vector<8x32xf32>
    %187 = math.exp %186 : vector<8x32xf32>
    %cst_57 = arith.constant 1.000000e+00 : f32
    %188 = vector.broadcast %cst_57 : f32 to vector<8x32xf32>
    %189 = arith.addf %188, %187 : vector<8x32xf32>
    %190 = arith.divf %188, %189 : vector<8x32xf32>
    %191 = vector.extract_strided_slice %184 {offsets = [0, 32], sizes = [8, 32], strides = [1, 1]} : vector<8x128xf32> to vector<8x32xf32>
    %192 = arith.negf %191 : vector<8x32xf32>
    %193 = math.exp %192 : vector<8x32xf32>
    %cst_58 = arith.constant 1.000000e+00 : f32
    %194 = vector.broadcast %cst_58 : f32 to vector<8x32xf32>
    %195 = arith.addf %194, %193 : vector<8x32xf32>
    %196 = arith.divf %194, %195 : vector<8x32xf32>
    %197 = vector.extract_strided_slice %184 {offsets = [0, 64], sizes = [8, 32], strides = [1, 1]} : vector<8x128xf32> to vector<8x32xf32>
    %198 = math.tanh %197 : vector<8x32xf32>
    %199 = vector.extract_strided_slice %184 {offsets = [0, 96], sizes = [8, 32], strides = [1, 1]} : vector<8x128xf32> to vector<8x32xf32>
    %200 = arith.negf %199 : vector<8x32xf32>
    %201 = math.exp %200 : vector<8x32xf32>
    %cst_59 = arith.constant 1.000000e+00 : f32
    %202 = vector.broadcast %cst_59 : f32 to vector<8x32xf32>
    %203 = arith.addf %202, %201 : vector<8x32xf32>
    %204 = arith.divf %202, %203 : vector<8x32xf32>
    %205 = arith.mulf %196, %140 : vector<8x32xf32>
    %206 = arith.mulf %190, %198 : vector<8x32xf32>
    %207 = arith.addf %205, %206 : vector<8x32xf32>
    %208 = math.tanh %207 : vector<8x32xf32>
    %209 = arith.mulf %204, %208 : vector<8x32xf32>
    %210 = arith.index_cast %c2_i32 : i32 to index
    %c0_60 = arith.constant 0 : index
    %c0_61 = arith.constant 0 : index
    %211 = vector.load %arg9[%210, %c0_60, %c0_61] : memref<8x8x32xf32, #tpu.memory_space<vmem>>, vector<1x8x32xf32>
    %212 = vector.shape_cast %211 : vector<1x8x32xf32> to vector<8x32xf32>
    %213 = vector.shape_cast %209 : vector<8x32xf32> to vector<1x8x32xf32>
    tpu.vector_store %arg9[%210, %c0_60, %c0_61], %213 {strides = array<i32>} : memref<8x8x32xf32, #tpu.memory_space<vmem>>, vector<1x8x32xf32>,
    %c3_i32 = arith.constant 3 : i32
    %214 = arith.index_cast %c3_i32 : i32 to index
    %c0_62 = arith.constant 0 : index
    %c0_63 = arith.constant 0 : index
    %215 = vector.load %arg2[%214, %c0_62, %c0_63] : memref<8x8x16xf32, #tpu.memory_space<vmem>>, vector<1x8x16xf32>
    %216 = vector.shape_cast %215 : vector<1x8x16xf32> to vector<8x16xf32>
    %cst_64 = arith.constant dense<0.000000e+00> : vector<8x128xf32>
    %217 = tpu.matmul %216, %3, %cst_64 {dimension_numbers = #tpu.dot_dimension_numbers<[1], [0], [0], [1], [0, 0, 1, 1], [], []>} : vector<8x16xf32>, vector<16x128xf32>, vector<8x128xf32> -> vector<8x128xf32>
    %cst_65 = arith.constant dense<0.000000e+00> : vector<8x128xf32>
    %218 = tpu.matmul %179, %4, %cst_65 {dimension_numbers = #tpu.dot_dimension_numbers<[1], [0], [0], [1], [0, 0, 1, 1], [], []>} : vector<8x32xf32>, vector<32x128xf32>, vector<8x128xf32> -> vector<8x128xf32>
    %219 = arith.addf %217, %218 : vector<8x128xf32>
    %220 = vector.broadcast %5 : vector<1x128xf32> to vector<8x128xf32>
    %221 = arith.addf %219, %220 : vector<8x128xf32>
    %222 = vector.extract_strided_slice %221 {offsets = [0, 0], sizes = [8, 32], strides = [1, 1]} : vector<8x128xf32> to vector<8x32xf32>
    %223 = arith.negf %222 : vector<8x32xf32>
    %224 = math.exp %223 : vector<8x32xf32>
    %cst_66 = arith.constant 1.000000e+00 : f32
    %225 = vector.broadcast %cst_66 : f32 to vector<8x32xf32>
    %226 = arith.addf %225, %224 : vector<8x32xf32>
    %227 = arith.divf %225, %226 : vector<8x32xf32>
    %228 = vector.extract_strided_slice %221 {offsets = [0, 32], sizes = [8, 32], strides = [1, 1]} : vector<8x128xf32> to vector<8x32xf32>
    %229 = arith.negf %228 : vector<8x32xf32>
    %230 = math.exp %229 : vector<8x32xf32>
    %cst_67 = arith.constant 1.000000e+00 : f32
    %231 = vector.broadcast %cst_67 : f32 to vector<8x32xf32>
    %232 = arith.addf %231, %230 : vector<8x32xf32>
    %233 = arith.divf %231, %232 : vector<8x32xf32>
    %234 = vector.extract_strided_slice %221 {offsets = [0, 64], sizes = [8, 32], strides = [1, 1]} : vector<8x128xf32> to vector<8x32xf32>
    %235 = math.tanh %234 : vector<8x32xf32>
    %236 = vector.extract_strided_slice %221 {offsets = [0, 96], sizes = [8, 32], strides = [1, 1]} : vector<8x128xf32> to vector<8x32xf32>
    %237 = arith.negf %236 : vector<8x32xf32>
    %238 = math.exp %237 : vector<8x32xf32>
    %cst_68 = arith.constant 1.000000e+00 : f32
    %239 = vector.broadcast %cst_68 : f32 to vector<8x32xf32>
    %240 = arith.addf %239, %238 : vector<8x32xf32>
    %241 = arith.divf %239, %240 : vector<8x32xf32>
    %242 = arith.mulf %233, %177 : vector<8x32xf32>
    %243 = arith.mulf %227, %235 : vector<8x32xf32>
    %244 = arith.addf %242, %243 : vector<8x32xf32>
    %245 = math.tanh %244 : vector<8x32xf32>
    %246 = arith.mulf %241, %245 : vector<8x32xf32>
    %cst_69 = arith.constant dense<0.000000e+00> : vector<8x128xf32>
    %247 = tpu.matmul %246, %6, %cst_69 {dimension_numbers = #tpu.dot_dimension_numbers<[1], [0], [0], [1], [0, 0, 1, 1], [], []>} : vector<8x32xf32>, vector<32x128xf32>, vector<8x128xf32> -> vector<8x128xf32>
    %cst_70 = arith.constant dense<0.000000e+00> : vector<8x128xf32>
    %248 = tpu.matmul %209, %7, %cst_70 {dimension_numbers = #tpu.dot_dimension_numbers<[1], [0], [0], [1], [0, 0, 1, 1], [], []>} : vector<8x32xf32>, vector<32x128xf32>, vector<8x128xf32> -> vector<8x128xf32>
    %249 = arith.addf %247, %248 : vector<8x128xf32>
    %250 = vector.broadcast %8 : vector<1x128xf32> to vector<8x128xf32>
    %251 = arith.addf %249, %250 : vector<8x128xf32>
    %252 = vector.extract_strided_slice %251 {offsets = [0, 0], sizes = [8, 32], strides = [1, 1]} : vector<8x128xf32> to vector<8x32xf32>
    %253 = arith.negf %252 : vector<8x32xf32>
    %254 = math.exp %253 : vector<8x32xf32>
    %cst_71 = arith.constant 1.000000e+00 : f32
    %255 = vector.broadcast %cst_71 : f32 to vector<8x32xf32>
    %256 = arith.addf %255, %254 : vector<8x32xf32>
    %257 = arith.divf %255, %256 : vector<8x32xf32>
    %258 = vector.extract_strided_slice %251 {offsets = [0, 32], sizes = [8, 32], strides = [1, 1]} : vector<8x128xf32> to vector<8x32xf32>
    %259 = arith.negf %258 : vector<8x32xf32>
    %260 = math.exp %259 : vector<8x32xf32>
    %cst_72 = arith.constant 1.000000e+00 : f32
    %261 = vector.broadcast %cst_72 : f32 to vector<8x32xf32>
    %262 = arith.addf %261, %260 : vector<8x32xf32>
    %263 = arith.divf %261, %262 : vector<8x32xf32>
    %264 = vector.extract_strided_slice %251 {offsets = [0, 64], sizes = [8, 32], strides = [1, 1]} : vector<8x128xf32> to vector<8x32xf32>
    %265 = math.tanh %264 : vector<8x32xf32>
    %266 = vector.extract_strided_slice %251 {offsets = [0, 96], sizes = [8, 32], strides = [1, 1]} : vector<8x128xf32> to vector<8x32xf32>
    %267 = arith.negf %266 : vector<8x32xf32>
    %268 = math.exp %267 : vector<8x32xf32>
    %cst_73 = arith.constant 1.000000e+00 : f32
    %269 = vector.broadcast %cst_73 : f32 to vector<8x32xf32>
    %270 = arith.addf %269, %268 : vector<8x32xf32>
    %271 = arith.divf %269, %270 : vector<8x32xf32>
    %272 = arith.mulf %263, %207 : vector<8x32xf32>
    %273 = arith.mulf %257, %265 : vector<8x32xf32>
    %274 = arith.addf %272, %273 : vector<8x32xf32>
    %275 = math.tanh %274 : vector<8x32xf32>
    %276 = arith.mulf %271, %275 : vector<8x32xf32>
    %277 = arith.index_cast %c3_i32 : i32 to index
    %c0_74 = arith.constant 0 : index
    %c0_75 = arith.constant 0 : index
    %278 = vector.load %arg9[%277, %c0_74, %c0_75] : memref<8x8x32xf32, #tpu.memory_space<vmem>>, vector<1x8x32xf32>
    %279 = vector.shape_cast %278 : vector<1x8x32xf32> to vector<8x32xf32>
    %280 = vector.shape_cast %276 : vector<8x32xf32> to vector<1x8x32xf32>
    tpu.vector_store %arg9[%277, %c0_74, %c0_75], %280 {strides = array<i32>} : memref<8x8x32xf32, #tpu.memory_space<vmem>>, vector<1x8x32xf32>,
    %c4_i32 = arith.constant 4 : i32
    %281 = arith.index_cast %c4_i32 : i32 to index
    %c0_76 = arith.constant 0 : index
    %c0_77 = arith.constant 0 : index
    %282 = vector.load %arg2[%281, %c0_76, %c0_77] : memref<8x8x16xf32, #tpu.memory_space<vmem>>, vector<1x8x16xf32>
    %283 = vector.shape_cast %282 : vector<1x8x16xf32> to vector<8x16xf32>
    %cst_78 = arith.constant dense<0.000000e+00> : vector<8x128xf32>
    %284 = tpu.matmul %283, %3, %cst_78 {dimension_numbers = #tpu.dot_dimension_numbers<[1], [0], [0], [1], [0, 0, 1, 1], [], []>} : vector<8x16xf32>, vector<16x128xf32>, vector<8x128xf32> -> vector<8x128xf32>
    %cst_79 = arith.constant dense<0.000000e+00> : vector<8x128xf32>
    %285 = tpu.matmul %246, %4, %cst_79 {dimension_numbers = #tpu.dot_dimension_numbers<[1], [0], [0], [1], [0, 0, 1, 1], [], []>} : vector<8x32xf32>, vector<32x128xf32>, vector<8x128xf32> -> vector<8x128xf32>
    %286 = arith.addf %284, %285 : vector<8x128xf32>
    %287 = vector.broadcast %5 : vector<1x128xf32> to vector<8x128xf32>
    %288 = arith.addf %286, %287 : vector<8x128xf32>
    %289 = vector.extract_strided_slice %288 {offsets = [0, 0], sizes = [8, 32], strides = [1, 1]} : vector<8x128xf32> to vector<8x32xf32>
    %290 = arith.negf %289 : vector<8x32xf32>
    %291 = math.exp %290 : vector<8x32xf32>
    %cst_80 = arith.constant 1.000000e+00 : f32
    %292 = vector.broadcast %cst_80 : f32 to vector<8x32xf32>
    %293 = arith.addf %292, %291 : vector<8x32xf32>
    %294 = arith.divf %292, %293 : vector<8x32xf32>
    %295 = vector.extract_strided_slice %288 {offsets = [0, 32], sizes = [8, 32], strides = [1, 1]} : vector<8x128xf32> to vector<8x32xf32>
    %296 = arith.negf %295 : vector<8x32xf32>
    %297 = math.exp %296 : vector<8x32xf32>
    %cst_81 = arith.constant 1.000000e+00 : f32
    %298 = vector.broadcast %cst_81 : f32 to vector<8x32xf32>
    %299 = arith.addf %298, %297 : vector<8x32xf32>
    %300 = arith.divf %298, %299 : vector<8x32xf32>
    %301 = vector.extract_strided_slice %288 {offsets = [0, 64], sizes = [8, 32], strides = [1, 1]} : vector<8x128xf32> to vector<8x32xf32>
    %302 = math.tanh %301 : vector<8x32xf32>
    %303 = vector.extract_strided_slice %288 {offsets = [0, 96], sizes = [8, 32], strides = [1, 1]} : vector<8x128xf32> to vector<8x32xf32>
    %304 = arith.negf %303 : vector<8x32xf32>
    %305 = math.exp %304 : vector<8x32xf32>
    %cst_82 = arith.constant 1.000000e+00 : f32
    %306 = vector.broadcast %cst_82 : f32 to vector<8x32xf32>
    %307 = arith.addf %306, %305 : vector<8x32xf32>
    %308 = arith.divf %306, %307 : vector<8x32xf32>
    %309 = arith.mulf %300, %244 : vector<8x32xf32>
    %310 = arith.mulf %294, %302 : vector<8x32xf32>
    %311 = arith.addf %309, %310 : vector<8x32xf32>
    %312 = math.tanh %311 : vector<8x32xf32>
    %313 = arith.mulf %308, %312 : vector<8x32xf32>
    %cst_83 = arith.constant dense<0.000000e+00> : vector<8x128xf32>
    %314 = tpu.matmul %313, %6, %cst_83 {dimension_numbers = #tpu.dot_dimension_numbers<[1], [0], [0], [1], [0, 0, 1, 1], [], []>} : vector<8x32xf32>, vector<32x128xf32>, vector<8x128xf32> -> vector<8x128xf32>
    %cst_84 = arith.constant dense<0.000000e+00> : vector<8x128xf32>
    %315 = tpu.matmul %276, %7, %cst_84 {dimension_numbers = #tpu.dot_dimension_numbers<[1], [0], [0], [1], [0, 0, 1, 1], [], []>} : vector<8x32xf32>, vector<32x128xf32>, vector<8x128xf32> -> vector<8x128xf32>
    %316 = arith.addf %314, %315 : vector<8x128xf32>
    %317 = vector.broadcast %8 : vector<1x128xf32> to vector<8x128xf32>
    %318 = arith.addf %316, %317 : vector<8x128xf32>
    %319 = vector.extract_strided_slice %318 {offsets = [0, 0], sizes = [8, 32], strides = [1, 1]} : vector<8x128xf32> to vector<8x32xf32>
    %320 = arith.negf %319 : vector<8x32xf32>
    %321 = math.exp %320 : vector<8x32xf32>
    %cst_85 = arith.constant 1.000000e+00 : f32
    %322 = vector.broadcast %cst_85 : f32 to vector<8x32xf32>
    %323 = arith.addf %322, %321 : vector<8x32xf32>
    %324 = arith.divf %322, %323 : vector<8x32xf32>
    %325 = vector.extract_strided_slice %318 {offsets = [0, 32], sizes = [8, 32], strides = [1, 1]} : vector<8x128xf32> to vector<8x32xf32>
    %326 = arith.negf %325 : vector<8x32xf32>
    %327 = math.exp %326 : vector<8x32xf32>
    %cst_86 = arith.constant 1.000000e+00 : f32
    %328 = vector.broadcast %cst_86 : f32 to vector<8x32xf32>
    %329 = arith.addf %328, %327 : vector<8x32xf32>
    %330 = arith.divf %328, %329 : vector<8x32xf32>
    %331 = vector.extract_strided_slice %318 {offsets = [0, 64], sizes = [8, 32], strides = [1, 1]} : vector<8x128xf32> to vector<8x32xf32>
    %332 = math.tanh %331 : vector<8x32xf32>
    %333 = vector.extract_strided_slice %318 {offsets = [0, 96], sizes = [8, 32], strides = [1, 1]} : vector<8x128xf32> to vector<8x32xf32>
    %334 = arith.negf %333 : vector<8x32xf32>
    %335 = math.exp %334 : vector<8x32xf32>
    %cst_87 = arith.constant 1.000000e+00 : f32
    %336 = vector.broadcast %cst_87 : f32 to vector<8x32xf32>
    %337 = arith.addf %336, %335 : vector<8x32xf32>
    %338 = arith.divf %336, %337 : vector<8x32xf32>
    %339 = arith.mulf %330, %274 : vector<8x32xf32>
    %340 = arith.mulf %324, %332 : vector<8x32xf32>
    %341 = arith.addf %339, %340 : vector<8x32xf32>
    %342 = math.tanh %341 : vector<8x32xf32>
    %343 = arith.mulf %338, %342 : vector<8x32xf32>
    %344 = arith.index_cast %c4_i32 : i32 to index
    %c0_88 = arith.constant 0 : index
    %c0_89 = arith.constant 0 : index
    %345 = vector.load %arg9[%344, %c0_88, %c0_89] : memref<8x8x32xf32, #tpu.memory_space<vmem>>, vector<1x8x32xf32>
    %346 = vector.shape_cast %345 : vector<1x8x32xf32> to vector<8x32xf32>
    %347 = vector.shape_cast %343 : vector<8x32xf32> to vector<1x8x32xf32>
    tpu.vector_store %arg9[%344, %c0_88, %c0_89], %347 {strides = array<i32>} : memref<8x8x32xf32, #tpu.memory_space<vmem>>, vector<1x8x32xf32>,
    %c5_i32 = arith.constant 5 : i32
    %348 = arith.index_cast %c5_i32 : i32 to index
    %c0_90 = arith.constant 0 : index
    %c0_91 = arith.constant 0 : index
    %349 = vector.load %arg2[%348, %c0_90, %c0_91] : memref<8x8x16xf32, #tpu.memory_space<vmem>>, vector<1x8x16xf32>
    %350 = vector.shape_cast %349 : vector<1x8x16xf32> to vector<8x16xf32>
    %cst_92 = arith.constant dense<0.000000e+00> : vector<8x128xf32>
    %351 = tpu.matmul %350, %3, %cst_92 {dimension_numbers = #tpu.dot_dimension_numbers<[1], [0], [0], [1], [0, 0, 1, 1], [], []>} : vector<8x16xf32>, vector<16x128xf32>, vector<8x128xf32> -> vector<8x128xf32>
    %cst_93 = arith.constant dense<0.000000e+00> : vector<8x128xf32>
    %352 = tpu.matmul %313, %4, %cst_93 {dimension_numbers = #tpu.dot_dimension_numbers<[1], [0], [0], [1], [0, 0, 1, 1], [], []>} : vector<8x32xf32>, vector<32x128xf32>, vector<8x128xf32> -> vector<8x128xf32>
    %353 = arith.addf %351, %352 : vector<8x128xf32>
    %354 = vector.broadcast %5 : vector<1x128xf32> to vector<8x128xf32>
    %355 = arith.addf %353, %354 : vector<8x128xf32>
    %356 = vector.extract_strided_slice %355 {offsets = [0, 0], sizes = [8, 32], strides = [1, 1]} : vector<8x128xf32> to vector<8x32xf32>
    %357 = arith.negf %356 : vector<8x32xf32>
    %358 = math.exp %357 : vector<8x32xf32>
    %cst_94 = arith.constant 1.000000e+00 : f32
    %359 = vector.broadcast %cst_94 : f32 to vector<8x32xf32>
    %360 = arith.addf %359, %358 : vector<8x32xf32>
    %361 = arith.divf %359, %360 : vector<8x32xf32>
    %362 = vector.extract_strided_slice %355 {offsets = [0, 32], sizes = [8, 32], strides = [1, 1]} : vector<8x128xf32> to vector<8x32xf32>
    %363 = arith.negf %362 : vector<8x32xf32>
    %364 = math.exp %363 : vector<8x32xf32>
    %cst_95 = arith.constant 1.000000e+00 : f32
    %365 = vector.broadcast %cst_95 : f32 to vector<8x32xf32>
    %366 = arith.addf %365, %364 : vector<8x32xf32>
    %367 = arith.divf %365, %366 : vector<8x32xf32>
    %368 = vector.extract_strided_slice %355 {offsets = [0, 64], sizes = [8, 32], strides = [1, 1]} : vector<8x128xf32> to vector<8x32xf32>
    %369 = math.tanh %368 : vector<8x32xf32>
    %370 = vector.extract_strided_slice %355 {offsets = [0, 96], sizes = [8, 32], strides = [1, 1]} : vector<8x128xf32> to vector<8x32xf32>
    %371 = arith.negf %370 : vector<8x32xf32>
    %372 = math.exp %371 : vector<8x32xf32>
    %cst_96 = arith.constant 1.000000e+00 : f32
    %373 = vector.broadcast %cst_96 : f32 to vector<8x32xf32>
    %374 = arith.addf %373, %372 : vector<8x32xf32>
    %375 = arith.divf %373, %374 : vector<8x32xf32>
    %376 = arith.mulf %367, %311 : vector<8x32xf32>
    %377 = arith.mulf %361, %369 : vector<8x32xf32>
    %378 = arith.addf %376, %377 : vector<8x32xf32>
    %379 = math.tanh %378 : vector<8x32xf32>
    %380 = arith.mulf %375, %379 : vector<8x32xf32>
    %cst_97 = arith.constant dense<0.000000e+00> : vector<8x128xf32>
    %381 = tpu.matmul %380, %6, %cst_97 {dimension_numbers = #tpu.dot_dimension_numbers<[1], [0], [0], [1], [0, 0, 1, 1], [], []>} : vector<8x32xf32>, vector<32x128xf32>, vector<8x128xf32> -> vector<8x128xf32>
    %cst_98 = arith.constant dense<0.000000e+00> : vector<8x128xf32>
    %382 = tpu.matmul %343, %7, %cst_98 {dimension_numbers = #tpu.dot_dimension_numbers<[1], [0], [0], [1], [0, 0, 1, 1], [], []>} : vector<8x32xf32>, vector<32x128xf32>, vector<8x128xf32> -> vector<8x128xf32>
    %383 = arith.addf %381, %382 : vector<8x128xf32>
    %384 = vector.broadcast %8 : vector<1x128xf32> to vector<8x128xf32>
    %385 = arith.addf %383, %384 : vector<8x128xf32>
    %386 = vector.extract_strided_slice %385 {offsets = [0, 0], sizes = [8, 32], strides = [1, 1]} : vector<8x128xf32> to vector<8x32xf32>
    %387 = arith.negf %386 : vector<8x32xf32>
    %388 = math.exp %387 : vector<8x32xf32>
    %cst_99 = arith.constant 1.000000e+00 : f32
    %389 = vector.broadcast %cst_99 : f32 to vector<8x32xf32>
    %390 = arith.addf %389, %388 : vector<8x32xf32>
    %391 = arith.divf %389, %390 : vector<8x32xf32>
    %392 = vector.extract_strided_slice %385 {offsets = [0, 32], sizes = [8, 32], strides = [1, 1]} : vector<8x128xf32> to vector<8x32xf32>
    %393 = arith.negf %392 : vector<8x32xf32>
    %394 = math.exp %393 : vector<8x32xf32>
    %cst_100 = arith.constant 1.000000e+00 : f32
    %395 = vector.broadcast %cst_100 : f32 to vector<8x32xf32>
    %396 = arith.addf %395, %394 : vector<8x32xf32>
    %397 = arith.divf %395, %396 : vector<8x32xf32>
    %398 = vector.extract_strided_slice %385 {offsets = [0, 64], sizes = [8, 32], strides = [1, 1]} : vector<8x128xf32> to vector<8x32xf32>
    %399 = math.tanh %398 : vector<8x32xf32>
    %400 = vector.extract_strided_slice %385 {offsets = [0, 96], sizes = [8, 32], strides = [1, 1]} : vector<8x128xf32> to vector<8x32xf32>
    %401 = arith.negf %400 : vector<8x32xf32>
    %402 = math.exp %401 : vector<8x32xf32>
    %cst_101 = arith.constant 1.000000e+00 : f32
    %403 = vector.broadcast %cst_101 : f32 to vector<8x32xf32>
    %404 = arith.addf %403, %402 : vector<8x32xf32>
    %405 = arith.divf %403, %404 : vector<8x32xf32>
    %406 = arith.mulf %397, %341 : vector<8x32xf32>
    %407 = arith.mulf %391, %399 : vector<8x32xf32>
    %408 = arith.addf %406, %407 : vector<8x32xf32>
    %409 = math.tanh %408 : vector<8x32xf32>
    %410 = arith.mulf %405, %409 : vector<8x32xf32>
    %411 = arith.index_cast %c5_i32 : i32 to index
    %c0_102 = arith.constant 0 : index
    %c0_103 = arith.constant 0 : index
    %412 = vector.load %arg9[%411, %c0_102, %c0_103] : memref<8x8x32xf32, #tpu.memory_space<vmem>>, vector<1x8x32xf32>
    %413 = vector.shape_cast %412 : vector<1x8x32xf32> to vector<8x32xf32>
    %414 = vector.shape_cast %410 : vector<8x32xf32> to vector<1x8x32xf32>
    tpu.vector_store %arg9[%411, %c0_102, %c0_103], %414 {strides = array<i32>} : memref<8x8x32xf32, #tpu.memory_space<vmem>>, vector<1x8x32xf32>,
    %c6_i32 = arith.constant 6 : i32
    %415 = arith.index_cast %c6_i32 : i32 to index
    %c0_104 = arith.constant 0 : index
    %c0_105 = arith.constant 0 : index
    %416 = vector.load %arg2[%415, %c0_104, %c0_105] : memref<8x8x16xf32, #tpu.memory_space<vmem>>, vector<1x8x16xf32>
    %417 = vector.shape_cast %416 : vector<1x8x16xf32> to vector<8x16xf32>
    %cst_106 = arith.constant dense<0.000000e+00> : vector<8x128xf32>
    %418 = tpu.matmul %417, %3, %cst_106 {dimension_numbers = #tpu.dot_dimension_numbers<[1], [0], [0], [1], [0, 0, 1, 1], [], []>} : vector<8x16xf32>, vector<16x128xf32>, vector<8x128xf32> -> vector<8x128xf32>
    %cst_107 = arith.constant dense<0.000000e+00> : vector<8x128xf32>
    %419 = tpu.matmul %380, %4, %cst_107 {dimension_numbers = #tpu.dot_dimension_numbers<[1], [0], [0], [1], [0, 0, 1, 1], [], []>} : vector<8x32xf32>, vector<32x128xf32>, vector<8x128xf32> -> vector<8x128xf32>
    %420 = arith.addf %418, %419 : vector<8x128xf32>
    %421 = vector.broadcast %5 : vector<1x128xf32> to vector<8x128xf32>
    %422 = arith.addf %420, %421 : vector<8x128xf32>
    %423 = vector.extract_strided_slice %422 {offsets = [0, 0], sizes = [8, 32], strides = [1, 1]} : vector<8x128xf32> to vector<8x32xf32>
    %424 = arith.negf %423 : vector<8x32xf32>
    %425 = math.exp %424 : vector<8x32xf32>
    %cst_108 = arith.constant 1.000000e+00 : f32
    %426 = vector.broadcast %cst_108 : f32 to vector<8x32xf32>
    %427 = arith.addf %426, %425 : vector<8x32xf32>
    %428 = arith.divf %426, %427 : vector<8x32xf32>
    %429 = vector.extract_strided_slice %422 {offsets = [0, 32], sizes = [8, 32], strides = [1, 1]} : vector<8x128xf32> to vector<8x32xf32>
    %430 = arith.negf %429 : vector<8x32xf32>
    %431 = math.exp %430 : vector<8x32xf32>
    %cst_109 = arith.constant 1.000000e+00 : f32
    %432 = vector.broadcast %cst_109 : f32 to vector<8x32xf32>
    %433 = arith.addf %432, %431 : vector<8x32xf32>
    %434 = arith.divf %432, %433 : vector<8x32xf32>
    %435 = vector.extract_strided_slice %422 {offsets = [0, 64], sizes = [8, 32], strides = [1, 1]} : vector<8x128xf32> to vector<8x32xf32>
    %436 = math.tanh %435 : vector<8x32xf32>
    %437 = vector.extract_strided_slice %422 {offsets = [0, 96], sizes = [8, 32], strides = [1, 1]} : vector<8x128xf32> to vector<8x32xf32>
    %438 = arith.negf %437 : vector<8x32xf32>
    %439 = math.exp %438 : vector<8x32xf32>
    %cst_110 = arith.constant 1.000000e+00 : f32
    %440 = vector.broadcast %cst_110 : f32 to vector<8x32xf32>
    %441 = arith.addf %440, %439 : vector<8x32xf32>
    %442 = arith.divf %440, %441 : vector<8x32xf32>
    %443 = arith.mulf %434, %378 : vector<8x32xf32>
    %444 = arith.mulf %428, %436 : vector<8x32xf32>
    %445 = arith.addf %443, %444 : vector<8x32xf32>
    %446 = math.tanh %445 : vector<8x32xf32>
    %447 = arith.mulf %442, %446 : vector<8x32xf32>
    %cst_111 = arith.constant dense<0.000000e+00> : vector<8x128xf32>
    %448 = tpu.matmul %447, %6, %cst_111 {dimension_numbers = #tpu.dot_dimension_numbers<[1], [0], [0], [1], [0, 0, 1, 1], [], []>} : vector<8x32xf32>, vector<32x128xf32>, vector<8x128xf32> -> vector<8x128xf32>
    %cst_112 = arith.constant dense<0.000000e+00> : vector<8x128xf32>
    %449 = tpu.matmul %410, %7, %cst_112 {dimension_numbers = #tpu.dot_dimension_numbers<[1], [0], [0], [1], [0, 0, 1, 1], [], []>} : vector<8x32xf32>, vector<32x128xf32>, vector<8x128xf32> -> vector<8x128xf32>
    %450 = arith.addf %448, %449 : vector<8x128xf32>
    %451 = vector.broadcast %8 : vector<1x128xf32> to vector<8x128xf32>
    %452 = arith.addf %450, %451 : vector<8x128xf32>
    %453 = vector.extract_strided_slice %452 {offsets = [0, 0], sizes = [8, 32], strides = [1, 1]} : vector<8x128xf32> to vector<8x32xf32>
    %454 = arith.negf %453 : vector<8x32xf32>
    %455 = math.exp %454 : vector<8x32xf32>
    %cst_113 = arith.constant 1.000000e+00 : f32
    %456 = vector.broadcast %cst_113 : f32 to vector<8x32xf32>
    %457 = arith.addf %456, %455 : vector<8x32xf32>
    %458 = arith.divf %456, %457 : vector<8x32xf32>
    %459 = vector.extract_strided_slice %452 {offsets = [0, 32], sizes = [8, 32], strides = [1, 1]} : vector<8x128xf32> to vector<8x32xf32>
    %460 = arith.negf %459 : vector<8x32xf32>
    %461 = math.exp %460 : vector<8x32xf32>
    %cst_114 = arith.constant 1.000000e+00 : f32
    %462 = vector.broadcast %cst_114 : f32 to vector<8x32xf32>
    %463 = arith.addf %462, %461 : vector<8x32xf32>
    %464 = arith.divf %462, %463 : vector<8x32xf32>
    %465 = vector.extract_strided_slice %452 {offsets = [0, 64], sizes = [8, 32], strides = [1, 1]} : vector<8x128xf32> to vector<8x32xf32>
    %466 = math.tanh %465 : vector<8x32xf32>
    %467 = vector.extract_strided_slice %452 {offsets = [0, 96], sizes = [8, 32], strides = [1, 1]} : vector<8x128xf32> to vector<8x32xf32>
    %468 = arith.negf %467 : vector<8x32xf32>
    %469 = math.exp %468 : vector<8x32xf32>
    %cst_115 = arith.constant 1.000000e+00 : f32
    %470 = vector.broadcast %cst_115 : f32 to vector<8x32xf32>
    %471 = arith.addf %470, %469 : vector<8x32xf32>
    %472 = arith.divf %470, %471 : vector<8x32xf32>
    %473 = arith.mulf %464, %408 : vector<8x32xf32>
    %474 = arith.mulf %458, %466 : vector<8x32xf32>
    %475 = arith.addf %473, %474 : vector<8x32xf32>
    %476 = math.tanh %475 : vector<8x32xf32>
    %477 = arith.mulf %472, %476 : vector<8x32xf32>
    %478 = arith.index_cast %c6_i32 : i32 to index
    %c0_116 = arith.constant 0 : index
    %c0_117 = arith.constant 0 : index
    %479 = vector.load %arg9[%478, %c0_116, %c0_117] : memref<8x8x32xf32, #tpu.memory_space<vmem>>, vector<1x8x32xf32>
    %480 = vector.shape_cast %479 : vector<1x8x32xf32> to vector<8x32xf32>
    %481 = vector.shape_cast %477 : vector<8x32xf32> to vector<1x8x32xf32>
    tpu.vector_store %arg9[%478, %c0_116, %c0_117], %481 {strides = array<i32>} : memref<8x8x32xf32, #tpu.memory_space<vmem>>, vector<1x8x32xf32>,
    %c7_i32 = arith.constant 7 : i32
    %482 = arith.index_cast %c7_i32 : i32 to index
    %c0_118 = arith.constant 0 : index
    %c0_119 = arith.constant 0 : index
    %483 = vector.load %arg2[%482, %c0_118, %c0_119] : memref<8x8x16xf32, #tpu.memory_space<vmem>>, vector<1x8x16xf32>
    %484 = vector.shape_cast %483 : vector<1x8x16xf32> to vector<8x16xf32>
    %cst_120 = arith.constant dense<0.000000e+00> : vector<8x128xf32>
    %485 = tpu.matmul %484, %3, %cst_120 {dimension_numbers = #tpu.dot_dimension_numbers<[1], [0], [0], [1], [0, 0, 1, 1], [], []>} : vector<8x16xf32>, vector<16x128xf32>, vector<8x128xf32> -> vector<8x128xf32>
    %cst_121 = arith.constant dense<0.000000e+00> : vector<8x128xf32>
    %486 = tpu.matmul %447, %4, %cst_121 {dimension_numbers = #tpu.dot_dimension_numbers<[1], [0], [0], [1], [0, 0, 1, 1], [], []>} : vector<8x32xf32>, vector<32x128xf32>, vector<8x128xf32> -> vector<8x128xf32>
    %487 = arith.addf %485, %486 : vector<8x128xf32>
    %488 = vector.broadcast %5 : vector<1x128xf32> to vector<8x128xf32>
    %489 = arith.addf %487, %488 : vector<8x128xf32>
    %490 = vector.extract_strided_slice %489 {offsets = [0, 0], sizes = [8, 32], strides = [1, 1]} : vector<8x128xf32> to vector<8x32xf32>
    %491 = arith.negf %490 : vector<8x32xf32>
    %492 = math.exp %491 : vector<8x32xf32>
    %cst_122 = arith.constant 1.000000e+00 : f32
    %493 = vector.broadcast %cst_122 : f32 to vector<8x32xf32>
    %494 = arith.addf %493, %492 : vector<8x32xf32>
    %495 = arith.divf %493, %494 : vector<8x32xf32>
    %496 = vector.extract_strided_slice %489 {offsets = [0, 32], sizes = [8, 32], strides = [1, 1]} : vector<8x128xf32> to vector<8x32xf32>
    %497 = arith.negf %496 : vector<8x32xf32>
    %498 = math.exp %497 : vector<8x32xf32>
    %cst_123 = arith.constant 1.000000e+00 : f32
    %499 = vector.broadcast %cst_123 : f32 to vector<8x32xf32>
    %500 = arith.addf %499, %498 : vector<8x32xf32>
    %501 = arith.divf %499, %500 : vector<8x32xf32>
    %502 = vector.extract_strided_slice %489 {offsets = [0, 64], sizes = [8, 32], strides = [1, 1]} : vector<8x128xf32> to vector<8x32xf32>
    %503 = math.tanh %502 : vector<8x32xf32>
    %504 = vector.extract_strided_slice %489 {offsets = [0, 96], sizes = [8, 32], strides = [1, 1]} : vector<8x128xf32> to vector<8x32xf32>
    %505 = arith.negf %504 : vector<8x32xf32>
    %506 = math.exp %505 : vector<8x32xf32>
    %cst_124 = arith.constant 1.000000e+00 : f32
    %507 = vector.broadcast %cst_124 : f32 to vector<8x32xf32>
    %508 = arith.addf %507, %506 : vector<8x32xf32>
    %509 = arith.divf %507, %508 : vector<8x32xf32>
    %510 = arith.mulf %501, %445 : vector<8x32xf32>
    %511 = arith.mulf %495, %503 : vector<8x32xf32>
    %512 = arith.addf %510, %511 : vector<8x32xf32>
    %513 = math.tanh %512 : vector<8x32xf32>
    %514 = arith.mulf %509, %513 : vector<8x32xf32>
    %cst_125 = arith.constant dense<0.000000e+00> : vector<8x128xf32>
    %515 = tpu.matmul %514, %6, %cst_125 {dimension_numbers = #tpu.dot_dimension_numbers<[1], [0], [0], [1], [0, 0, 1, 1], [], []>} : vector<8x32xf32>, vector<32x128xf32>, vector<8x128xf32> -> vector<8x128xf32>
    %cst_126 = arith.constant dense<0.000000e+00> : vector<8x128xf32>
    %516 = tpu.matmul %477, %7, %cst_126 {dimension_numbers = #tpu.dot_dimension_numbers<[1], [0], [0], [1], [0, 0, 1, 1], [], []>} : vector<8x32xf32>, vector<32x128xf32>, vector<8x128xf32> -> vector<8x128xf32>
    %517 = arith.addf %515, %516 : vector<8x128xf32>
    %518 = vector.broadcast %8 : vector<1x128xf32> to vector<8x128xf32>
    %519 = arith.addf %517, %518 : vector<8x128xf32>
    %520 = vector.extract_strided_slice %519 {offsets = [0, 0], sizes = [8, 32], strides = [1, 1]} : vector<8x128xf32> to vector<8x32xf32>
    %521 = arith.negf %520 : vector<8x32xf32>
    %522 = math.exp %521 : vector<8x32xf32>
    %cst_127 = arith.constant 1.000000e+00 : f32
    %523 = vector.broadcast %cst_127 : f32 to vector<8x32xf32>
    %524 = arith.addf %523, %522 : vector<8x32xf32>
    %525 = arith.divf %523, %524 : vector<8x32xf32>
    %526 = vector.extract_strided_slice %519 {offsets = [0, 32], sizes = [8, 32], strides = [1, 1]} : vector<8x128xf32> to vector<8x32xf32>
    %527 = arith.negf %526 : vector<8x32xf32>
    %528 = math.exp %527 : vector<8x32xf32>
    %cst_128 = arith.constant 1.000000e+00 : f32
    %529 = vector.broadcast %cst_128 : f32 to vector<8x32xf32>
    %530 = arith.addf %529, %528 : vector<8x32xf32>
    %531 = arith.divf %529, %530 : vector<8x32xf32>
    %532 = vector.extract_strided_slice %519 {offsets = [0, 64], sizes = [8, 32], strides = [1, 1]} : vector<8x128xf32> to vector<8x32xf32>
    %533 = math.tanh %532 : vector<8x32xf32>
    %534 = vector.extract_strided_slice %519 {offsets = [0, 96], sizes = [8, 32], strides = [1, 1]} : vector<8x128xf32> to vector<8x32xf32>
    %535 = arith.negf %534 : vector<8x32xf32>
    %536 = math.exp %535 : vector<8x32xf32>
    %cst_129 = arith.constant 1.000000e+00 : f32
    %537 = vector.broadcast %cst_129 : f32 to vector<8x32xf32>
    %538 = arith.addf %537, %536 : vector<8x32xf32>
    %539 = arith.divf %537, %538 : vector<8x32xf32>
    %540 = arith.mulf %531, %475 : vector<8x32xf32>
    %541 = arith.mulf %525, %533 : vector<8x32xf32>
    %542 = arith.addf %540, %541 : vector<8x32xf32>
    %543 = math.tanh %542 : vector<8x32xf32>
    %544 = arith.mulf %539, %543 : vector<8x32xf32>
    %545 = arith.index_cast %c7_i32 : i32 to index
    %c0_130 = arith.constant 0 : index
    %c0_131 = arith.constant 0 : index
    %546 = vector.load %arg9[%545, %c0_130, %c0_131] : memref<8x8x32xf32, #tpu.memory_space<vmem>>, vector<1x8x32xf32>
    %547 = vector.shape_cast %546 : vector<1x8x32xf32> to vector<8x32xf32>
    %548 = vector.shape_cast %544 : vector<8x32xf32> to vector<1x8x32xf32>
    tpu.vector_store %arg9[%545, %c0_130, %c0_131], %548 {strides = array<i32>} : memref<8x8x32xf32, #tpu.memory_space<vmem>>, vector<1x8x32xf32>,
    %c8_i32 = arith.constant 8 : i32
    %c0_132 = arith.constant 0 : index
    %c0_133 = arith.constant 0 : index
    %549 = vector.load %arg10[%c0_132, %c0_133] : memref<8x32xf32, #tpu.memory_space<vmem>>, vector<8x32xf32>
    tpu.vector_store %arg10[%c0_132, %c0_133], %514 {strides = array<i32>} : memref<8x32xf32, #tpu.memory_space<vmem>>, vector<8x32xf32>,
    %c0_134 = arith.constant 0 : index
    %c0_135 = arith.constant 0 : index
    %550 = vector.load %arg11[%c0_134, %c0_135] : memref<8x32xf32, #tpu.memory_space<vmem>>, vector<8x32xf32>
    tpu.vector_store %arg11[%c0_134, %c0_135], %512 {strides = array<i32>} : memref<8x32xf32, #tpu.memory_space<vmem>>, vector<8x32xf32>,
    %c0_136 = arith.constant 0 : index
    %c0_137 = arith.constant 0 : index
    %551 = vector.load %arg12[%c0_136, %c0_137] : memref<8x32xf32, #tpu.memory_space<vmem>>, vector<8x32xf32>
    tpu.vector_store %arg12[%c0_136, %c0_137], %544 {strides = array<i32>} : memref<8x32xf32, #tpu.memory_space<vmem>>, vector<8x32xf32>,
    %c0_138 = arith.constant 0 : index
    %c0_139 = arith.constant 0 : index
    %552 = vector.load %arg13[%c0_138, %c0_139] : memref<8x32xf32, #tpu.memory_space<vmem>>, vector<8x32xf32>
    tpu.vector_store %arg13[%c0_138, %c0_139], %542 {strides = array<i32>} : memref<8x32xf32, #tpu.memory_space<vmem>>, vector<8x32xf32>,
    return
  }
  func.func @transform_0(%arg0: i32, %arg1: i32) -> (i32, i32, i32) {
    %c0_i32 = arith.constant 0 : i32
    %c0_i32_0 = arith.constant 0 : i32
    return %arg1, %arg0, %c0_i32 : i32, i32, i32
  }
  func.func @transform_1(%arg0: i32, %arg1: i32) -> (i32, i32) {
    %c0_i32 = arith.constant 0 : i32
    %c0_i32_0 = arith.constant 0 : i32
    %c0_i32_1 = arith.constant 0 : i32
    return %c0_i32, %c0_i32_0 : i32, i32
  }
  func.func @transform_2(%arg0: i32, %arg1: i32) -> (i32, i32) {
    %c0_i32 = arith.constant 0 : i32
    %c0_i32_0 = arith.constant 0 : i32
    %c0_i32_1 = arith.constant 0 : i32
    return %c0_i32, %c0_i32_0 : i32, i32
  }
  func.func @transform_3(%arg0: i32, %arg1: i32) -> (i32, i32) {
    %c0_i32 = arith.constant 0 : i32
    %c0_i32_0 = arith.constant 0 : i32
    %c0_i32_1 = arith.constant 0 : i32
    return %c0_i32, %c0_i32_0 : i32, i32
  }
  func.func @transform_4(%arg0: i32, %arg1: i32) -> (i32, i32) {
    %c0_i32 = arith.constant 0 : i32
    %c0_i32_0 = arith.constant 0 : i32
    %c0_i32_1 = arith.constant 0 : i32
    return %c0_i32, %c0_i32_0 : i32, i32
  }
  func.func @transform_5(%arg0: i32, %arg1: i32) -> (i32, i32) {
    %c0_i32 = arith.constant 0 : i32
    %c0_i32_0 = arith.constant 0 : i32
    %c0_i32_1 = arith.constant 0 : i32
    return %c0_i32, %c0_i32_0 : i32, i32
  }
  func.func @transform_6(%arg0: i32, %arg1: i32) -> (i32, i32) {
    %c0_i32 = arith.constant 0 : i32
    %c0_i32_0 = arith.constant 0 : i32
    %c0_i32_1 = arith.constant 0 : i32
    return %c0_i32, %c0_i32_0 : i32, i32
  }
  func.func @transform_7(%arg0: i32, %arg1: i32) -> (i32, i32, i32) {
    %c0_i32 = arith.constant 0 : i32
    %c0_i32_0 = arith.constant 0 : i32
    return %arg1, %arg0, %c0_i32 : i32, i32, i32
  }
}

</mosaic_0001>

<bundles_post_ra>
// kernel: tpu_custom_call.1
= control target key start
LH: loop header
LB: loop body
LE: loop exit
PB: predicated region body
PF: predicated region fallthrough
CT: control target
= control target key end

     0   :  { %12 = vsyncpa [#allocation7], 0  ;;  %s4478_s0 = inlined_call_operand.hbm [shape: f32[8,8,16], index: 0, kind: input, shape index: {}]   ;;  %s4479_s1 = inlined_call_operand.hbm [shape: f32[16,128], index: 1, kind: input, shape index: {}]   ;;  %s4480_s2 = inlined_call_operand.hbm [shape: f32[32,128], index: 2, kind: input, shape index: {}]   ;;  %s4481_s3 = inlined_call_operand.vmem [shape: f32[1,128], index: 3, kind: input, shape index: {}]   ;;  %s4482_s4 = inlined_call_operand.hbm [shape: f32[32,128], index: 4, kind: input, shape index: {}]   ;;  %s4483_s5 = inlined_call_operand.hbm [shape: f32[32,128], index: 5, kind: input, shape index: {}]   ;;  %s4484_s6 = inlined_call_operand.vmem [shape: f32[1,128], index: 6, kind: input, shape index: {}]   ;;  %s4485_s7 = inlined_call_operand.hbm [shape: f32[8,8,32], index: 7, kind: output, shape index: {}]  }
   0x1   :  { %13 = vsyncpa [#allocation10], 0 }
   0x2   :  { %14 = vsyncpa [#allocation13], 0 }
   0x3   :  { %15 = vsyncpa [#allocation8], 0  ;;  %s3930_s24 = smov [#allocation9]   ;;  %s3931_s26 = smov [#allocation12]  }
   0x4   :  { %s33_s25 = sshll.u32 %s3930_s24, 4  ;;  %s59_s27 = sshll.u32 %s3931_s26, 4  ;;  %s34_s25 = int_to_ptr.vmem [resolvable:$true] %s33_s25  ;;  %s3984_s27 = int_to_ptr.vmem [resolvable:$true] %s59_s27 }
   0x5   :  { %s3790_s30 = scalar_lea.hbm %s4479_s1, 256 }
   0x6   :  { %p3791_p0 = scmp.ne.s32.totalorder %s4479_s1, %s3790_s30  ;;  %p3794_p1 = scmp.lt.u32.totalorder %s3790_s30, %s4479_s1 }
   0x8   :  { %p3796_p2 = pnand %p3794_p1, %p3791_p0 }
   0xa   :  { %3799 = shalt.err (!%p3796_p2)
}
   0xb   :  { %s3800_s12 = scalar_lea.vmem %s34_s25, 256  ;;  %p3805_p4 = scmp.lt.s32.totalorder %s34_s25, %s34_s25 }
   0xc   :  { %p3801_p3 = scmp.ne.s32.totalorder %s34_s25, %s3800_s12  ;;  %p3806_p5 = scmp.lt.s32.totalorder %s3800_s12, %s3800_s12 }
   0xe   :  { %p3807_p6 = por %p3806_p5, %p3805_p4 }
  0x10   :  { %p3808_p7 = pnand %p3807_p6, %p3801_p3 }
  0x12   :  { %3811 = shalt.err (!%p3808_p7)
}
  0x13   :  { %s3932_s13 = smov 128   ;;  %s3933_s14 = smov 8  }
  0x14   :  { %39 = dma.hbm_to_vmem [thread:$0]  %s4479_s1, 256, %s34_s25, [#allocation10], %s3932_s13, %s3932_s13, %s3933_s14  }
  0x15   :  { %s3812_s19 = scalar_lea.hbm %s4482_s4, 512 }
  0x16   :  { %p3813_p8 = scmp.ne.s32.totalorder %s4482_s4, %s3812_s19  ;;  %p3816_p9 = scmp.lt.u32.totalorder %s3812_s19, %s4482_s4 }
  0x18   :  { %p3818_p10 = pnand %p3816_p9, %p3813_p8 }
  0x1a   :  { %3821 = shalt.err (!%p3818_p10)
}
  0x1b   :  { %s3822_s24 = scalar_lea.vmem %s3984_s27, 512  ;;  %p3827_p12 = scmp.lt.s32.totalorder %s3984_s27, %s3984_s27 }
  0x1c   :  { %p3823_p11 = scmp.ne.s32.totalorder %s3984_s27, %s3822_s24  ;;  %p3828_p13 = scmp.lt.s32.totalorder %s3822_s24, %s3822_s24 }
  0x1e   :  { %p3829_p0 = por %p3828_p13, %p3827_p12 }
  0x20   :  { %p3830_p1 = pnand %p3829_p0, %p3823_p11 }
  0x22   :  { %3833 = shalt.err (!%p3830_p1)
}
  0x23   :  { %65 = dma.hbm_to_vmem [thread:$0]  %s4482_s4, 512, %s3984_s27, [#allocation13], %s3932_s13, %s3932_s13, %s3933_s14  }
  0x24   :  { %s3934_s26 = smov [#allocation6]   ;;  %s3935_s29 = smov [#allocation11]  }
  0x25   :  { %s21_s28 = sshll.u32 %s3934_s26, 4  ;;  %s45_s30 = sshll.u32 %s3935_s29, 4  ;;  %s22_s28 = int_to_ptr.vmem [resolvable:$true] %s21_s28  ;;  %s4021_s30 = int_to_ptr.vmem [resolvable:$true] %s45_s30 }
  0x26   :  { %s3834_s10 = scalar_lea.hbm %s4478_s0, 1024 }
  0x27   :  { %p3835_p2 = scmp.ne.s32.totalorder %s4478_s0, %s3834_s10  ;;  %p3838_p3 = scmp.lt.u32.totalorder %s3834_s10, %s4478_s0 }
  0x29   :  { %p3840_p4 = pnand %p3838_p3, %p3835_p2 }
  0x2b   :  { %3843 = shalt.err (!%p3840_p4)
}
  0x2c   :  { %s3844_s4 = scalar_lea.vmem %s22_s28, 1024  ;;  %p3849_p6 = scmp.lt.s32.totalorder %s22_s28, %s22_s28 }
  0x2d   :  { %p3845_p5 = scmp.ne.s32.totalorder %s22_s28, %s3844_s4  ;;  %p3850_p7 = scmp.lt.s32.totalorder %s3844_s4, %s3844_s4 }
  0x2f   :  { %p3851_p8 = por %p3850_p7, %p3849_p6 }
  0x31   :  { %p3852_p9 = pnand %p3851_p8, %p3845_p5 }
  0x33   :  { %3855 = shalt.err (!%p3852_p9)
}
  0x34   :  { %27 = dma.hbm_to_vmem [thread:$0]  %s4478_s0, 1024, %s22_s28, [#allocation7], %s3932_s13, %s3932_s13, %s3933_s14  }
  0x35   :  { %s3856_s20 = scalar_lea.hbm %s4480_s2, 512 }
  0x36   :  { %p3857_p10 = scmp.ne.s32.totalorder %s4480_s2, %s3856_s20  ;;  %p3860_p11 = scmp.lt.u32.totalorder %s3856_s20, %s4480_s2 }
  0x38   :  { %p3862_p12 = pnand %p3860_p11, %p3857_p10 }
  0x3a   :  { %3865 = shalt.err (!%p3862_p12)
}
  0x3b   :  { %s3866_s1 = scalar_lea.vmem %s4021_s30, 512  ;;  %p3871_p0 = scmp.lt.s32.totalorder %s4021_s30, %s4021_s30 }
  0x3c   :  { %p3867_p13 = scmp.ne.s32.totalorder %s4021_s30, %s3866_s1  ;;  %p3872_p1 = scmp.lt.s32.totalorder %s3866_s1, %s3866_s1 }
  0x3e   :  { %p3873_p2 = por %p3872_p1, %p3871_p0 }
  0x40   :  { %p3874_p3 = pnand %p3873_p2, %p3867_p13 }
  0x42   :  { %3877 = shalt.err (!%p3874_p3)
}
  0x43   :  { %51 = dma.hbm_to_vmem [thread:$0]  %s4480_s2, 512, %s4021_s30, [#allocation10], %s3932_s13, %s3932_s13, %s3933_s14  }
  0x44   :  { %s3936_s26 = smov [#allocation14]   ;;  %s3878_s9 = scalar_lea.hbm %s4483_s5, 512 }
  0x45   :  { %s71_s28 = sshll.u32 %s3936_s26, 4  ;;  %p3879_p4 = scmp.ne.s32.totalorder %s4483_s5, %s3878_s9  ;;  %s72_s28 = int_to_ptr.vmem [resolvable:$true] %s71_s28 }
  0x46   :  { %p3882_p5 = scmp.lt.u32.totalorder %s3878_s9, %s4483_s5 }
  0x48   :  { %p3884_p6 = pnand %p3882_p5, %p3879_p4 }
  0x4a   :  { %3887 = shalt.err (!%p3884_p6)
}
  0x4b   :  { %s3888_s16 = scalar_lea.vmem %s72_s28, 512  ;;  %p3893_p8 = scmp.lt.s32.totalorder %s72_s28, %s72_s28 }
  0x4c   :  { %p3889_p7 = scmp.ne.s32.totalorder %s72_s28, %s3888_s16  ;;  %p3894_p9 = scmp.lt.s32.totalorder %s3888_s16, %s3888_s16 }
  0x4e   :  { %p3895_p10 = por %p3894_p9, %p3893_p8 }
  0x50   :  { %p3896_p11 = pnand %p3895_p10, %p3889_p7 }
  0x52   :  { %3899 = shalt.err (!%p3896_p11)
}
  0x53   :  { %77 = dma.hbm_to_vmem [thread:$0]  %s4483_s5, 512, %s72_s28, [#allocation13], %s3932_s13, %s3932_s13, %s3933_s14  }
  0x54   :  { %3922 = dma.done.wait [#allocation7], 1024  }
  0x55   :  { %3923 = vsyncadd [#allocation7], 4294966272 }
  0x56   :  { %3924 = dma.done.wait [#allocation10], 768  }
  0x57   :  { %3925 = vsyncadd [#allocation10], 4294966528 }
  0x58   :  { %3926 = dma.done.wait [#allocation13], 1024  }
  0x59   :  { %3927 = vsyncadd [#allocation13], 4294966272  ;;  %v3937_v0 = vmov 0.0|0.0   ;;  %vm99_vm0 = vcmask 261120   ;;  %vm3938_vm1 = vmmov 0   ;;  %v3939_v1 = vmov 0.0  }
  0x5a   :  { %3478 = vmatprep.subr.bf16.mxu0 %v3937_v0  ;;  %3484 = vmatprep.subr.bf16.mxu1 %v3937_v0  ;;  %100 = vst.msk [vmem:[#allocation2] sm:$0xff] %vm99_vm0, %v3939_v1  ;;  %101 = vst.msk [vmem:[#allocation3] sm:$0xff] %vm99_vm0, %v3939_v1  ;;  %v106_v2 = vld [vmem:[#allocation11] sm:$0xff]  ;;  %v107_v3 = vld [vmem:[#allocation11 + $0x8] sm:$0xff]  ;;  %vm199_vm2 = vcmask 130048   ;;  %s3940_s27 = smov 64  }
  0x5b   :  { %3173 = vmatprep.mubr.msk.f32.mxu1 %vm3938_vm1, %v3939_v1  ;;  %3166 = vmatprep.mubr.msk.f32.mxu0 %vm3938_vm1, %v3939_v1  ;;  %102 = vst.msk [vmem:[#allocation4] sm:$0xff] %vm99_vm0, %v3939_v1  ;;  %103 = vst.msk [vmem:[#allocation5] sm:$0xff] %vm99_vm0, %v3939_v1  ;;  %v104_v4 = vld [vmem:[#allocation9] sm:$0xff]  ;;  %v4087_v5 = vpack.c.bf16 %v107_v3, %v106_v2  ;;  %v105_v6 = vld [vmem:[#allocation9 + $0x8] sm:$0xff]  ;;  %s3941_s17 = smov 32   ;;  %s3943_s23 = smov [#allocation15]  }
  0x5c   :  { %v108_v7 = vld [vmem:[#allocation11 + $0x10] sm:$0xff]  ;;  %v109_v8 = vld [vmem:[#allocation11 + $0x18] sm:$0xff]  ;;  %v4089_v9 = vpack.c.bf16 %v105_v6, %v104_v4  ;;  %v115_v32 = vld [vmem:[#allocation14] sm:$0xff]  ;;  %s2950_s24 = sshll.u32 %s3943_s23, 4  ;;  %s2951_s24 = int_to_ptr.vmem [resolvable:$true] %s2950_s24 }
  0x5d   :  { %3480 = vmatpush3.bf16.msra.mxu0 %v4087_v5  ;;  %v4092_v10 = vpack.c.bf16 %v109_v8, %v108_v7  ;;  %v124_v11 = vld [vmem:[#allocation6] sm:$0xff]  ;;  %v116_v33 = vld [vmem:[#allocation14 + $0x8] sm:$0xff]  ;;  %v118_v36 = vld [vmem:[#allocation14 + $0x18] sm:$0xff]  ;;  %s3900_s1 = scalar_lea.vmem %s2951_s24, 1024  ;;  %p3905_p13 = scmp.lt.s32.totalorder %s2951_s24, %s2951_s24 }
  0x5e   :  { %3481 = vmatprep.subr.bf16.mxu0 %v3937_v0  ;;  %3486 = vmatpush3.bf16.msra.mxu1 %v4089_v9  ;;  %v4108_v15 = vld [vmem:[%s4481_s3] ss:$0 sm:$0xff]  ;;  %v4117_v35 = vpack.c.bf16 %v116_v33, %v115_v32  ;;  %v111_v37 = vld [vmem:[#allocation12] sm:$0xff]  ;;  %v112_v38 = vld [vmem:[#allocation12 + $0x8] sm:$0xff]  ;;  %p3901_p12 = scmp.ne.s32.totalorder %s2951_s24, %s3900_s1  ;;  %p3906_p0 = scmp.lt.s32.totalorder %s3900_s1, %s3900_s1 }
  0x5f   :  { %3487 = vmatprep.subr.bf16.mxu1 %v3937_v0  ;;  %v117_v34 = vld [vmem:[#allocation14 + $0x10] sm:$0xff]  ;;  %v4119_v39 = vpack.c.bf16 %v112_v38, %v111_v37  ;;  %v114_v41 = vld [vmem:[#allocation12 + $0x18] sm:$0xff] }
  0x60   :  { %v113_v40 = vld [vmem:[#allocation12 + $0x10] sm:$0xff]  ;;  %v4122_v42 = vpack.c.bf16 %v118_v36, %v117_v34  ;;  %v497_v51 = vld [vmem:[#allocation6 + $0x8] sm:$0xff]  ;;  %v845_v36 = vld [vmem:[#allocation6 + $0x10] sm:$0xff]  ;;  %p3907_p1 = por %p3906_p0, %p3905_p13 }
  0x61   :  { %3483 = vmatpush3.bf16.msra.mxu0 %v4092_v10  ;;  %3174 = vmatmul.mubr.msk.f32.vlgmr.msra.gmra.mrb[0].mxu1 %vm199_vm2, %v124_v11  ;;  %v120_v12 = vld [vmem:[#allocation2] sm:$0xff]  ;;  %v121_v21 = vld [vmem:[#allocation3] sm:$0xff]  ;;  %v4126_v43 = vpack.c.bf16 %v114_v41, %v113_v40 }
  0x62   :  { %3493 = vmatprep.subr.bf16.mxu0 %v3937_v0  ;;  %3184 = vmatprep.mubr.msk.f32.mxu1 %vm3938_vm1, %v3939_v1  ;;  %v122_v44 = vld [vmem:[#allocation4] sm:$0xff]  ;;  %v4164_v52 = vld [vmem:[%s4484_s6] ss:$0 sm:$0xff]  ;;  %v123_v2 = vld [vmem:[#allocation5] sm:$0xff]  ;;  %p3908_p2 = pnand %p3907_p1, %p3901_p12 }
  0x63   :  { %3489 = vmatpush3.bf16.msra.mxu1 %v4117_v35 }
  0x64   :  { %3167 = vmatmul.mubr.msk.f32.vlgmr.msra.gmra.mrb[0].mxu0 %vm99_vm0, %v120_v12  ;;  %3490 = vmatprep.subr.bf16.mxu1 %v3937_v0 }
  0x65   :  { %3195 = vmatprep.mubr.msk.f32.mxu0 %vm3938_vm1, %v3939_v1  ;;  %3495 = vmatpush3.bf16.msra.mxu0 %v4119_v39 }
  0x66   :  { %3496 = vmatprep.subr.bf16.mxu0 %v3937_v0 }
  0x67   :  { %3492 = vmatpush3.bf16.msra.mxu1 %v4122_v42 }
  0x68   :  { %3499 = vmatprep.subr.bf16.mxu1 %v3937_v0 }
  0x69   :  { %3498 = vmatpush3.bf16.msra.mxu0 %v4126_v43 }
  0x6a   :  { %3505 = vmatprep.subr.bf16.mxu0 %v3937_v0  ;;  %3185 = vmatmul.mubr.msk.f32.vlgmr.msra.gmra.mrb[2].mxu1 %vm99_vm0, %v122_v44 }
  0x6b   :  { %3501 = vmatpush3.bf16.msra.mxu1 %v4087_v5  ;;  %3206 = vmatprep.mubr.msk.f32.mxu1 %vm3938_vm1, %v3939_v1 }
  0x6c   :  { %3502 = vmatprep.subr.bf16.mxu1 %v3937_v0 }
  0x6f   :  { %3504 = vmatpush3.bf16.msra.mxu1 %v4092_v10 }
  0x70   :  { %3514 = vmatprep.subr.bf16.mxu1 %v3937_v0 }
 0x134   :  { %v269_v13 = vpop.f32.mrb[0].mxu1 }
 0x135   :  { %v3175_v14 = vpop.f32.mrb[1].mxu1 }
 0x137   :  { %v195_v16 = vpop.f32.mrb[0].mxu0 }
 0x138   :  { %v270_v17 = vadd.f32 %v269_v13, %v195_v16  ;;  %v3168_v18 = vpop.f32.mrb[1].mxu0 }
 0x13a   :  { %v279_v19 = vadd.f32 %v4108_v15, %v270_v17 }
 0x13c   :  { %3660 = vtanh.f32 %v279_v19  ;;  %v2967_v22 = vmul.f32 -1.442695, %v279_v19 }
 0x13d   :  { %v377_v48 = vpop.f32.mrb[2].mxu1 }
 0x13e   :  { %3662 = vpow2.f32 %v2967_v22  ;;  %v3186_v49 = vpop.f32.mrb[3].mxu1 }
 0x146   :  { %v3661_v20 = vpop.eup %3660 }
 0x147   :  { %293 = vrot.lane.b32.xlu0 %v3661_v20, %s3940_s27 }
 0x148   :  { %v3663_v23 = vpop.eup %3662 }
 0x149   :  { %v283_v24 = vadd.f32 1.0, %v3663_v23 }
 0x14b   :  { %288 = vrot.lane.b32.xlu0 %v121_v21, %s3941_s17  ;;  %3664 = vrcp.f32 %v283_v24 }
 0x155   :  { %v3665_v25 = vpop.eup %3664 }
 0x1b9   :  { %v294_v26 = vpop.permute.xlu0 %293 }
 0x1ba   :  { %v296_v27 = vmul.f32 %v3665_v25, %v294_v26 }
 0x1bc   :  { %298 = vrot.lane.b32.xlu1 %v296_v27, %s3941_s17 }
 0x1bd   :  { %v289_v28 = vpop.permute.xlu0 %288 }
 0x1be   :  { %v291_v29 = vmul.f32 %v3665_v25, %v289_v28 }
 0x22e   :  { %v299_v30 = vpop.permute.xlu1 %298 }
 0x22f   :  { %v4114_v31 = vadd.f32 %v299_v30, %v291_v29 }
 0x231   :  { %3666 = vtanh.f32 %v4114_v31 }
 0x23b   :  { %v3667_v45 = vpop.eup %3666 }
 0x23c   :  { %304 = vrot.lane.b32.xlu1 %v3667_v45, %s3940_s27 }
 0x2ae   :  { %v305_v46 = vpop.permute.xlu1 %304 }
 0x2af   :  { %v307_v47 = vmul.f32 %v3665_v25, %v305_v46 }
 0x2b1   :  { %382 = vrot.lane.b32.xlu0 %v307_v47, %s3941_s17 }
 0x323   :  { %v383_v50 = vpop.permute.xlu0 %382 }
 0x324   :  { %3196 = vmatmul.mubr.msk.f32.vlgmr.msra.gmra.mrb[2].mxu0 %vm99_vm0, %v383_v50  ;;  %3207 = vmatmul.mubr.msk.f32.vlgmr.msra.gmra.mrb[4].mxu1 %vm99_vm0, %v383_v50 }
 0x325   :  { %3507 = vmatpush3.bf16.msra.mxu0 %v4089_v9  ;;  %3213 = vmatprep.mubr.msk.f32.mxu0 %vm3938_vm1, %v3939_v1 }
 0x326   :  { %3508 = vmatprep.subr.bf16.mxu0 %v3937_v0  ;;  %3516 = vmatpush3.bf16.msra.mxu1 %v4119_v39 }
 0x327   :  { %3517 = vmatprep.subr.bf16.mxu1 %v3937_v0  ;;  %3235 = vmatprep.mubr.msk.f32.mxu1 %vm3938_vm1, %v3939_v1 }
 0x328   :  { %3214 = vmatmul.mubr.msk.f32.vlgmr.msra.gmra.mrb[4].mxu0 %vm199_vm2, %v497_v51 }
 0x329   :  { %3510 = vmatpush3.bf16.msra.mxu0 %v4117_v35  ;;  %3224 = vmatprep.mubr.msk.f32.mxu0 %vm3938_vm1, %v3939_v1 }
 0x32a   :  { %3511 = vmatprep.subr.bf16.mxu0 %v3937_v0  ;;  %3519 = vmatpush3.bf16.msra.mxu1 %v4126_v43 }
 0x32b   :  { %3526 = vmatprep.subr.bf16.mxu1 %v3937_v0 }
 0x32d   :  { %3513 = vmatpush3.bf16.msra.mxu0 %v4122_v42 }
 0x32e   :  { %3520 = vmatprep.subr.bf16.mxu0 %v3937_v0 }
 0x3f7   :  { %v452_v53 = vpop.f32.mrb[2].mxu0  ;;  %v564_v54 = vpop.f32.mrb[4].mxu1 }
 0x3f8   :  { %v453_v55 = vadd.f32 %v452_v53, %v377_v48  ;;  %v3197_v56 = vpop.f32.mrb[3].mxu0  ;;  %v3208_v57 = vpop.f32.mrb[5].mxu1 }
 0x3fa   :  { %v462_v58 = vadd.f32 %v4164_v52, %v453_v55 }
 0x3fb   :  { %v637_v59 = vpop.f32.mrb[4].mxu0 }
 0x3fc   :  { %3668 = vtanh.f32 %v462_v58  ;;  %v638_v60 = vadd.f32 %v637_v59, %v564_v54  ;;  %v3215_v61 = vpop.f32.mrb[5].mxu0  ;;  %v2971_v4 = vmul.f32 -1.442695, %v462_v58 }
 0x3fe   :  { %v641_v62 = vadd.f32 %v4108_v15, %v638_v60 }
 0x400   :  { %3670 = vtanh.f32 %v641_v62  ;;  %v2974_v6 = vmul.f32 -1.442695, %v641_v62 }
 0x401   :  { %3672 = vpow2.f32 %v2971_v4 }
 0x402   :  { %3674 = vpow2.f32 %v2974_v6 }
 0x406   :  { %v3669_v63 = vpop.eup %3668 }
 0x407   :  { %476 = vrot.lane.b32.xlu1 %v3669_v63, %s3940_s27 }
 0x40a   :  { %v3671_v3 = vpop.eup %3670 }
 0x40b   :  { %471 = vrot.lane.b32.xlu1 %v123_v2, %s3941_s17  ;;  %651 = vrot.lane.b32.xlu0 %v3671_v3, %s3940_s27  ;;  %v3673_v7 = vpop.eup %3672 }
 0x40c   :  { %v466_v8 = vadd.f32 1.0, %v3673_v7  ;;  %v3675_v11 = vpop.eup %3674 }
 0x40d   :  { %v645_v12 = vadd.f32 1.0, %v3675_v11 }
 0x40e   :  { %3676 = vrcp.f32 %v466_v8 }
 0x40f   :  { %3678 = vrcp.f32 %v645_v12 }
 0x418   :  { %v3677_v13 = vpop.eup %3676 }
 0x419   :  { %v3679_v17 = vpop.eup %3678 }
 0x41a   :  { %v649_v24 = vmul.f32 %v3679_v17, %v4114_v31 }
 0x479   :  { %v477_v14 = vpop.permute.xlu1 %476 }
 0x47a   :  { %v479_v16 = vmul.f32 %v3677_v13, %v477_v14 }
 0x47c   :  { %481 = vrot.lane.b32.xlu0 %v479_v16, %s3941_s17 }
 0x47d   :  { %v652_v18 = vpop.permute.xlu0 %651  ;;  %v472_v20 = vpop.permute.xlu1 %471 }
 0x47e   :  { %v654_v19 = vmul.f32 %v3679_v17, %v652_v18  ;;  %v474_v21 = vmul.f32 %v3677_v13, %v472_v20 }
 0x480   :  { %656 = vrot.lane.b32.xlu1 %v654_v19, %s3941_s17 }
 0x4ee   :  { %v482_v22 = vpop.permute.xlu0 %481 }
 0x4ef   :  { %v4173_v23 = vadd.f32 %v482_v22, %v474_v21 }
 0x4f1   :  { %3680 = vtanh.f32 %v4173_v23 }
 0x4f2   :  { %v657_v25 = vpop.permute.xlu1 %656 }
 0x4f3   :  { %v4177_v26 = vadd.f32 %v657_v25, %v649_v24 }
 0x4f5   :  { %3682 = vtanh.f32 %v4177_v26 }
 0x4fb   :  { %v3681_v27 = vpop.eup %3680 }
 0x4fc   :  { %487 = vrot.lane.b32.xlu0 %v3681_v27, %s3940_s27 }
 0x4ff   :  { %v3683_v28 = vpop.eup %3682 }
 0x500   :  { %662 = vrot.lane.b32.xlu1 %v3683_v28, %s3940_s27 }
 0x56e   :  { %v488_v29 = vpop.permute.xlu0 %487 }
 0x56f   :  { %v490_v30 = vmul.f32 %v3677_v13, %v488_v29 }
 0x571   :  { %492 = vrot.lane.b32.xlu0 %v490_v30, %s3941_s17 }
 0x572   :  { %v663_v32 = vpop.permute.xlu1 %662 }
 0x573   :  { %v665_v33 = vmul.f32 %v3679_v17, %v663_v32 }
 0x575   :  { %739 = vrot.lane.b32.xlu1 %v665_v33, %s3941_s17 }
 0x5e3   :  { %v493_v31 = vpop.permute.xlu0 %492 }
 0x5e4   :  { %495 = vst.msk [vmem:[#allocation15] sm:$0xff] %vm99_vm0, %v493_v31  ;;  %3225 = vmatmul.mubr.msk.f32.vlgmr.msra.gmra.mrb[6].mxu0 %vm99_vm0, %v493_v31 }
 0x5e5   :  { %3522 = vmatpush3.bf16.msra.mxu0 %v4087_v5  ;;  %3246 = vmatprep.mubr.msk.f32.mxu0 %vm3938_vm1, %v3939_v1 }
 0x5e6   :  { %3523 = vmatprep.subr.bf16.mxu0 %v3937_v0 }
 0x5e7   :  { %v740_v34 = vpop.permute.xlu1 %739 }
 0x5e8   :  { %3236 = vmatmul.mubr.msk.f32.vlgmr.msra.gmra.mrb[6].mxu1 %vm99_vm0, %v740_v34 }
 0x5e9   :  { %3525 = vmatpush3.bf16.msra.mxu0 %v4092_v10  ;;  %3528 = vmatpush3.bf16.msra.mxu1 %v4089_v9 }
 0x5ea   :  { %3253 = vmatprep.mubr.msk.f32.mxu1 %vm3938_vm1, %v3939_v1  ;;  %3529 = vmatprep.subr.bf16.mxu1 %v3937_v0 }
 0x5eb   :  { %3535 = vmatprep.subr.bf16.mxu0 %v3937_v0 }
 0x5ec   :  { %3247 = vmatmul.mubr.msk.f32.vlgmr.msra.gmra.mrb[8].mxu0 %vm99_vm0, %v740_v34  ;;  %3254 = vmatmul.mubr.msk.f32.vlgmr.msra.gmra.mrb[8].mxu1 %vm199_vm2, %v845_v36 }
 0x5ed   :  { %3531 = vmatpush3.bf16.msra.mxu1 %v4117_v35  ;;  %3537 = vmatpush3.bf16.msra.mxu0 %v4119_v39 }
 0x5ee   :  { %3532 = vmatprep.subr.bf16.mxu1 %v3937_v0  ;;  %3264 = vmatprep.mubr.msk.f32.mxu1 %vm3938_vm1, %v3939_v1 }
 0x5ef   :  { %3538 = vmatprep.subr.bf16.mxu0 %v3937_v0  ;;  %3275 = vmatprep.mubr.msk.f32.mxu0 %vm3938_vm1, %v3939_v1 }
 0x5f1   :  { %3534 = vmatpush3.bf16.msra.mxu1 %v4122_v42  ;;  %3540 = vmatpush3.bf16.msra.mxu0 %v4126_v43 }
 0x5f2   :  { %3541 = vmatprep.subr.bf16.mxu1 %v3937_v0  ;;  %3547 = vmatprep.subr.bf16.mxu0 %v3937_v0 }
 0x6b7   :  { %v734_v37 = vpop.f32.mrb[6].mxu0 }
 0x6b8   :  { %v3226_v38 = vpop.f32.mrb[7].mxu0 }
 0x6bb   :  { %v809_v40 = vpop.f32.mrb[6].mxu1 }
 0x6bc   :  { %v810_v41 = vadd.f32 %v809_v40, %v734_v37  ;;  %v3237_v44 = vpop.f32.mrb[7].mxu1 }
 0x6be   :  { %v813_v45 = vadd.f32 %v4164_v52, %v810_v41 }
 0x6bf   :  { %v912_v46 = vpop.f32.mrb[8].mxu0  ;;  %v985_v47 = vpop.f32.mrb[8].mxu1 }
 0x6c0   :  { %3684 = vtanh.f32 %v813_v45  ;;  %v3248_v48 = vpop.f32.mrb[9].mxu0  ;;  %v986_v49 = vadd.f32 %v985_v47, %v912_v46  ;;  %v3255_v50 = vpop.f32.mrb[9].mxu1  ;;  %v2977_v55 = vmul.f32 -1.442695, %v813_v45 }
 0x6c2   :  { %v989_v51 = vadd.f32 %v4108_v15, %v986_v49 }
 0x6c4   :  { %3686 = vtanh.f32 %v989_v51  ;;  %v2980_v56 = vmul.f32 -1.442695, %v989_v51 }
 0x6c5   :  { %3688 = vpow2.f32 %v2977_v55 }
 0x6c6   :  { %3690 = vpow2.f32 %v2980_v56 }
 0x6ca   :  { %v3685_v53 = vpop.eup %3684 }
 0x6cb   :  { %823 = vrot.lane.b32.xlu0 %v3685_v53, %s3940_s27 }
 0x6ce   :  { %v3687_v54 = vpop.eup %3686 }
 0x6cf   :  { %999 = vrot.lane.b32.xlu1 %v3687_v54, %s3940_s27  ;;  %v3689_v57 = vpop.eup %3688 }
 0x6d0   :  { %v817_v58 = vadd.f32 1.0, %v3689_v57  ;;  %v3691_v59 = vpop.eup %3690 }
 0x6d1   :  { %v993_v60 = vadd.f32 1.0, %v3691_v59 }
 0x6d2   :  { %3692 = vrcp.f32 %v817_v58 }
 0x6d3   :  { %3694 = vrcp.f32 %v993_v60 }
 0x6dc   :  { %v3693_v61 = vpop.eup %3692 }
 0x6dd   :  { %v3695_v2 = vpop.eup %3694  ;;  %v821_v6 = vmul.f32 %v3693_v61, %v4173_v23  ;;  %v1193_v23 = vld [vmem:[#allocation6 + $0x18] sm:$0xff] }
 0x6de   :  { %v997_v11 = vmul.f32 %v3695_v2, %v4177_v26 }
 0x73d   :  { %v824_v62 = vpop.permute.xlu0 %823 }
 0x73e   :  { %v826_v63 = vmul.f32 %v3693_v61, %v824_v62 }
 0x740   :  { %828 = vrot.lane.b32.xlu0 %v826_v63, %s3941_s17 }
 0x741   :  { %v1000_v3 = vpop.permute.xlu1 %999 }
 0x742   :  { %v1002_v4 = vmul.f32 %v3695_v2, %v1000_v3 }
 0x744   :  { %1004 = vrot.lane.b32.xlu1 %v1002_v4, %s3941_s17 }
 0x7b2   :  { %v829_v7 = vpop.permute.xlu0 %828 }
 0x7b3   :  { %v4218_v8 = vadd.f32 %v829_v7, %v821_v6 }
 0x7b5   :  { %3696 = vtanh.f32 %v4218_v8 }
 0x7b6   :  { %v1005_v12 = vpop.permute.xlu1 %1004 }
 0x7b7   :  { %v4222_v13 = vadd.f32 %v1005_v12, %v997_v11 }
 0x7b9   :  { %3698 = vtanh.f32 %v4222_v13 }
 0x7bf   :  { %v3697_v14 = vpop.eup %3696 }
 0x7c0   :  { %834 = vrot.lane.b32.xlu0 %v3697_v14, %s3940_s27 }
 0x7c3   :  { %v3699_v16 = vpop.eup %3698 }
 0x7c4   :  { %1010 = vrot.lane.b32.xlu1 %v3699_v16, %s3940_s27 }
 0x832   :  { %v835_v17 = vpop.permute.xlu0 %834 }
 0x833   :  { %v837_v18 = vmul.f32 %v3693_v61, %v835_v17 }
 0x835   :  { %839 = vrot.lane.b32.xlu0 %v837_v18, %s3941_s17 }
 0x836   :  { %v1011_v19 = vpop.permute.xlu1 %1010 }
 0x837   :  { %v1013_v20 = vmul.f32 %v3695_v2, %v1011_v19 }
 0x839   :  { %1087 = vrot.lane.b32.xlu1 %v1013_v20, %s3941_s17 }
 0x8a7   :  { %v840_v21 = vpop.permute.xlu0 %839 }
 0x8a8   :  { %843 = vst.msk [vmem:[#allocation15 + $0x8] sm:$0xff] %vm99_vm0, %v840_v21  ;;  %3265 = vmatmul.mubr.msk.f32.vlgmr.msra.gmra.mrb[10].mxu1 %vm99_vm0, %v840_v21 }
 0x8a9   :  { %3543 = vmatpush3.bf16.msra.mxu1 %v4087_v5  ;;  %3286 = vmatprep.mubr.msk.f32.mxu1 %vm3938_vm1, %v3939_v1 }
 0x8aa   :  { %3544 = vmatprep.subr.bf16.mxu1 %v3937_v0 }
 0x8ab   :  { %v1088_v22 = vpop.permute.xlu1 %1087 }
 0x8ac   :  { %3276 = vmatmul.mubr.msk.f32.vlgmr.msra.gmra.mrb[10].mxu0 %vm99_vm0, %v1088_v22 }
 0x8ad   :  { %3546 = vmatpush3.bf16.msra.mxu1 %v4092_v10  ;;  %3549 = vmatpush3.bf16.msra.mxu0 %v4089_v9 }
 0x8ae   :  { %3293 = vmatprep.mubr.msk.f32.mxu0 %vm3938_vm1, %v3939_v1  ;;  %3550 = vmatprep.subr.bf16.mxu0 %v3937_v0 }
 0x8af   :  { %3556 = vmatprep.subr.bf16.mxu1 %v3937_v0 }
 0x8b0   :  { %3287 = vmatmul.mubr.msk.f32.vlgmr.msra.gmra.mrb[12].mxu1 %vm99_vm0, %v1088_v22  ;;  %3294 = vmatmul.mubr.msk.f32.vlgmr.msra.gmra.mrb[12].mxu0 %vm199_vm2, %v1193_v23 }
 0x8b1   :  { %3552 = vmatpush3.bf16.msra.mxu0 %v4117_v35  ;;  %3558 = vmatpush3.bf16.msra.mxu1 %v4119_v39 }
 0x8b2   :  { %3553 = vmatprep.subr.bf16.mxu0 %v3937_v0  ;;  %3304 = vmatprep.mubr.msk.f32.mxu0 %vm3938_vm1, %v3939_v1 }
 0x8b3   :  { %3559 = vmatprep.subr.bf16.mxu1 %v3937_v0  ;;  %3315 = vmatprep.mubr.msk.f32.mxu1 %vm3938_vm1, %v3939_v1 }
 0x8b5   :  { %3555 = vmatpush3.bf16.msra.mxu0 %v4122_v42  ;;  %3561 = vmatpush3.bf16.msra.mxu1 %v4126_v43 }
 0x8b6   :  { %3562 = vmatprep.subr.bf16.mxu0 %v3937_v0  ;;  %3568 = vmatprep.subr.bf16.mxu1 %v3937_v0 }
 0x97b   :  { %v1082_v24 = vpop.f32.mrb[10].mxu1 }
 0x97c   :  { %v3266_v25 = vpop.f32.mrb[11].mxu1 }
 0x97f   :  { %v1157_v26 = vpop.f32.mrb[10].mxu0 }
 0x980   :  { %v1158_v27 = vadd.f32 %v1157_v26, %v1082_v24  ;;  %v3277_v28 = vpop.f32.mrb[11].mxu0 }
 0x982   :  { %v1161_v29 = vadd.f32 %v4164_v52, %v1158_v27 }
 0x983   :  { %v1260_v30 = vpop.f32.mrb[12].mxu1  ;;  %v1333_v32 = vpop.f32.mrb[12].mxu0 }
 0x984   :  { %3700 = vtanh.f32 %v1161_v29  ;;  %v3288_v33 = vpop.f32.mrb[13].mxu1  ;;  %v1334_v31 = vadd.f32 %v1333_v32, %v1260_v30  ;;  %v3295_v34 = vpop.f32.mrb[13].mxu0  ;;  %v2983_v40 = vmul.f32 -1.442695, %v1161_v29 }
 0x986   :  { %v1337_v36 = vadd.f32 %v4108_v15, %v1334_v31 }
 0x988   :  { %3702 = vtanh.f32 %v1337_v36  ;;  %v2986_v41 = vmul.f32 -1.442695, %v1337_v36 }
 0x989   :  { %3704 = vpow2.f32 %v2983_v40 }
 0x98a   :  { %3706 = vpow2.f32 %v2986_v41 }
 0x98e   :  { %v3701_v37 = vpop.eup %3700 }
 0x98f   :  { %1171 = vrot.lane.b32.xlu0 %v3701_v37, %s3940_s27 }
 0x992   :  { %v3703_v38 = vpop.eup %3702 }
 0x993   :  { %1347 = vrot.lane.b32.xlu1 %v3703_v38, %s3940_s27  ;;  %v3705_v44 = vpop.eup %3704 }
 0x994   :  { %v1165_v45 = vadd.f32 1.0, %v3705_v44  ;;  %v3707_v46 = vpop.eup %3706 }
 0x995   :  { %v1341_v47 = vadd.f32 1.0, %v3707_v46 }
 0x996   :  { %3708 = vrcp.f32 %v1165_v45 }
 0x997   :  { %3710 = vrcp.f32 %v1341_v47 }
 0x9a0   :  { %v3709_v48 = vpop.eup %3708 }
 0x9a1   :  { %v3711_v51 = vpop.eup %3710  ;;  %v1169_v55 = vmul.f32 %v3709_v48, %v4218_v8  ;;  %v1541_v8 = vld [vmem:[#allocation6 + $0x20] sm:$0xff] }
 0x9a2   :  { %v1345_v58 = vmul.f32 %v3711_v51, %v4222_v13 }
 0xa01   :  { %v1172_v49 = vpop.permute.xlu0 %1171 }
 0xa02   :  { %v1174_v50 = vmul.f32 %v3709_v48, %v1172_v49 }
 0xa04   :  { %1176 = vrot.lane.b32.xlu0 %v1174_v50, %s3941_s17 }
 0xa05   :  { %v1348_v53 = vpop.permute.xlu1 %1347 }
 0xa06   :  { %v1350_v54 = vmul.f32 %v3711_v51, %v1348_v53 }
 0xa08   :  { %1352 = vrot.lane.b32.xlu1 %v1350_v54, %s3941_s17 }
 0xa76   :  { %v1177_v56 = vpop.permute.xlu0 %1176 }
 0xa77   :  { %v4263_v57 = vadd.f32 %v1177_v56, %v1169_v55 }
 0xa79   :  { %3712 = vtanh.f32 %v4263_v57 }
 0xa7a   :  { %v1353_v59 = vpop.permute.xlu1 %1352 }
 0xa7b   :  { %v4267_v60 = vadd.f32 %v1353_v59, %v1345_v58 }
 0xa7d   :  { %3714 = vtanh.f32 %v4267_v60 }
 0xa83   :  { %v3713_v61 = vpop.eup %3712 }
 0xa84   :  { %1182 = vrot.lane.b32.xlu0 %v3713_v61, %s3940_s27 }
 0xa87   :  { %v3715_v62 = vpop.eup %3714 }
 0xa88   :  { %1358 = vrot.lane.b32.xlu1 %v3715_v62, %s3940_s27 }
 0xaf6   :  { %v1183_v63 = vpop.permute.xlu0 %1182 }
 0xaf7   :  { %v1185_v2 = vmul.f32 %v3709_v48, %v1183_v63 }
 0xaf9   :  { %1187 = vrot.lane.b32.xlu0 %v1185_v2, %s3941_s17 }
 0xafa   :  { %v1359_v3 = vpop.permute.xlu1 %1358 }
 0xafb   :  { %v1361_v4 = vmul.f32 %v3711_v51, %v1359_v3 }
 0xafd   :  { %1435 = vrot.lane.b32.xlu1 %v1361_v4, %s3941_s17 }
 0xb6b   :  { %v1188_v6 = vpop.permute.xlu0 %1187 }
 0xb6c   :  { %1191 = vst.msk [vmem:[#allocation15 + $0x10] sm:$0xff] %vm99_vm0, %v1188_v6  ;;  %3305 = vmatmul.mubr.msk.f32.vlgmr.msra.gmra.mrb[14].mxu0 %vm99_vm0, %v1188_v6 }
 0xb6d   :  { %3564 = vmatpush3.bf16.msra.mxu0 %v4087_v5  ;;  %3326 = vmatprep.mubr.msk.f32.mxu0 %vm3938_vm1, %v3939_v1 }
 0xb6e   :  { %3565 = vmatprep.subr.bf16.mxu0 %v3937_v0 }
 0xb6f   :  { %v1436_v7 = vpop.permute.xlu1 %1435 }
 0xb70   :  { %3316 = vmatmul.mubr.msk.f32.vlgmr.msra.gmra.mrb[14].mxu1 %vm99_vm0, %v1436_v7 }
 0xb71   :  { %3567 = vmatpush3.bf16.msra.mxu0 %v4092_v10  ;;  %3570 = vmatpush3.bf16.msra.mxu1 %v4089_v9 }
 0xb72   :  { %3333 = vmatprep.mubr.msk.f32.mxu1 %vm3938_vm1, %v3939_v1  ;;  %3571 = vmatprep.subr.bf16.mxu1 %v3937_v0 }
 0xb73   :  { %3577 = vmatprep.subr.bf16.mxu0 %v3937_v0 }
 0xb74   :  { %3327 = vmatmul.mubr.msk.f32.vlgmr.msra.gmra.mrb[16].mxu0 %vm99_vm0, %v1436_v7  ;;  %3334 = vmatmul.mubr.msk.f32.vlgmr.msra.gmra.mrb[16].mxu1 %vm199_vm2, %v1541_v8 }
 0xb75   :  { %3573 = vmatpush3.bf16.msra.mxu1 %v4117_v35  ;;  %3579 = vmatpush3.bf16.msra.mxu0 %v4119_v39 }
 0xb76   :  { %3574 = vmatprep.subr.bf16.mxu1 %v3937_v0  ;;  %3344 = vmatprep.mubr.msk.f32.mxu1 %vm3938_vm1, %v3939_v1 }
 0xb77   :  { %3580 = vmatprep.subr.bf16.mxu0 %v3937_v0  ;;  %3355 = vmatprep.mubr.msk.f32.mxu0 %vm3938_vm1, %v3939_v1 }
 0xb79   :  { %3576 = vmatpush3.bf16.msra.mxu1 %v4122_v42  ;;  %3582 = vmatpush3.bf16.msra.mxu0 %v4126_v43 }
 0xb7a   :  { %3583 = vmatprep.subr.bf16.mxu1 %v3937_v0  ;;  %3589 = vmatprep.subr.bf16.mxu0 %v3937_v0 }
 0xc3f   :  { %v1430_v11 = vpop.f32.mrb[14].mxu0 }
 0xc40   :  { %v3306_v12 = vpop.f32.mrb[15].mxu0 }
 0xc43   :  { %v1505_v13 = vpop.f32.mrb[14].mxu1 }
 0xc44   :  { %v1506_v14 = vadd.f32 %v1505_v13, %v1430_v11  ;;  %v3317_v16 = vpop.f32.mrb[15].mxu1 }
 0xc46   :  { %v1509_v17 = vadd.f32 %v4164_v52, %v1506_v14 }
 0xc47   :  { %v1608_v18 = vpop.f32.mrb[16].mxu0  ;;  %v1681_v19 = vpop.f32.mrb[16].mxu1 }
 0xc48   :  { %3716 = vtanh.f32 %v1509_v17  ;;  %v3328_v20 = vpop.f32.mrb[17].mxu0  ;;  %v1682_v21 = vadd.f32 %v1681_v19, %v1608_v18  ;;  %v3335_v22 = vpop.f32.mrb[17].mxu1  ;;  %v2989_v26 = vmul.f32 -1.442695, %v1509_v17 }
 0xc4a   :  { %v1685_v23 = vadd.f32 %v4108_v15, %v1682_v21 }
 0xc4c   :  { %3718 = vtanh.f32 %v1685_v23  ;;  %v2992_v27 = vmul.f32 -1.442695, %v1685_v23 }
 0xc4d   :  { %3720 = vpow2.f32 %v2989_v26 }
 0xc4e   :  { %3722 = vpow2.f32 %v2992_v27 }
 0xc52   :  { %v3717_v24 = vpop.eup %3716 }
 0xc53   :  { %1519 = vrot.lane.b32.xlu0 %v3717_v24, %s3940_s27 }
 0xc56   :  { %v3719_v25 = vpop.eup %3718 }
 0xc57   :  { %1695 = vrot.lane.b32.xlu1 %v3719_v25, %s3940_s27  ;;  %v3721_v28 = vpop.eup %3720 }
 0xc58   :  { %v1513_v29 = vadd.f32 1.0, %v3721_v28  ;;  %v3723_v30 = vpop.eup %3722 }
 0xc59   :  { %v1689_v32 = vadd.f32 1.0, %v3723_v30 }
 0xc5a   :  { %3724 = vrcp.f32 %v1513_v29 }
 0xc5b   :  { %3726 = vrcp.f32 %v1689_v32 }
 0xc64   :  { %v3725_v33 = vpop.eup %3724 }
 0xc65   :  { %v3727_v36 = vpop.eup %3726  ;;  %v1517_v40 = vmul.f32 %v3725_v33, %v4263_v57  ;;  %v1889_v57 = vld [vmem:[#allocation6 + $0x28] sm:$0xff] }
 0xc66   :  { %v1693_v45 = vmul.f32 %v3727_v36, %v4267_v60 }
 0xcc5   :  { %v1520_v31 = vpop.permute.xlu0 %1519 }
 0xcc6   :  { %v1522_v34 = vmul.f32 %v3725_v33, %v1520_v31 }
 0xcc8   :  { %1524 = vrot.lane.b32.xlu0 %v1522_v34, %s3941_s17 }
 0xcc9   :  { %v1696_v37 = vpop.permute.xlu1 %1695 }
 0xcca   :  { %v1698_v38 = vmul.f32 %v3727_v36, %v1696_v37 }
 0xccc   :  { %1700 = vrot.lane.b32.xlu1 %v1698_v38, %s3941_s17 }
 0xd3a   :  { %v1525_v41 = vpop.permute.xlu0 %1524 }
 0xd3b   :  { %v4308_v44 = vadd.f32 %v1525_v41, %v1517_v40 }
 0xd3d   :  { %3728 = vtanh.f32 %v4308_v44 }
 0xd3e   :  { %v1701_v46 = vpop.permute.xlu1 %1700 }
 0xd3f   :  { %v4312_v47 = vadd.f32 %v1701_v46, %v1693_v45 }
 0xd41   :  { %3730 = vtanh.f32 %v4312_v47 }
 0xd47   :  { %v3729_v48 = vpop.eup %3728 }
 0xd48   :  { %1530 = vrot.lane.b32.xlu0 %v3729_v48, %s3940_s27 }
 0xd4b   :  { %v3731_v49 = vpop.eup %3730 }
 0xd4c   :  { %1706 = vrot.lane.b32.xlu1 %v3731_v49, %s3940_s27 }
 0xdba   :  { %v1531_v50 = vpop.permute.xlu0 %1530 }
 0xdbb   :  { %v1533_v51 = vmul.f32 %v3725_v33, %v1531_v50 }
 0xdbd   :  { %1535 = vrot.lane.b32.xlu0 %v1533_v51, %s3941_s17 }
 0xdbe   :  { %v1707_v53 = vpop.permute.xlu1 %1706 }
 0xdbf   :  { %v1709_v54 = vmul.f32 %v3727_v36, %v1707_v53 }
 0xdc1   :  { %1783 = vrot.lane.b32.xlu1 %v1709_v54, %s3941_s17 }
 0xe2f   :  { %v1536_v55 = vpop.permute.xlu0 %1535 }
 0xe30   :  { %1539 = vst.msk [vmem:[#allocation15 + $0x18] sm:$0xff] %vm99_vm0, %v1536_v55  ;;  %3345 = vmatmul.mubr.msk.f32.vlgmr.msra.gmra.mrb[18].mxu1 %vm99_vm0, %v1536_v55 }
 0xe31   :  { %3585 = vmatpush3.bf16.msra.mxu1 %v4087_v5  ;;  %3366 = vmatprep.mubr.msk.f32.mxu1 %vm3938_vm1, %v3939_v1 }
 0xe32   :  { %3586 = vmatprep.subr.bf16.mxu1 %v3937_v0 }
 0xe33   :  { %v1784_v56 = vpop.permute.xlu1 %1783 }
 0xe34   :  { %3356 = vmatmul.mubr.msk.f32.vlgmr.msra.gmra.mrb[18].mxu0 %vm99_vm0, %v1784_v56 }
 0xe35   :  { %3588 = vmatpush3.bf16.msra.mxu1 %v4092_v10  ;;  %3591 = vmatpush3.bf16.msra.mxu0 %v4089_v9 }
 0xe36   :  { %3373 = vmatprep.mubr.msk.f32.mxu0 %vm3938_vm1, %v3939_v1  ;;  %3592 = vmatprep.subr.bf16.mxu0 %v3937_v0 }
 0xe37   :  { %3598 = vmatprep.subr.bf16.mxu1 %v3937_v0 }
 0xe38   :  { %3367 = vmatmul.mubr.msk.f32.vlgmr.msra.gmra.mrb[20].mxu1 %vm99_vm0, %v1784_v56  ;;  %3374 = vmatmul.mubr.msk.f32.vlgmr.msra.gmra.mrb[20].mxu0 %vm199_vm2, %v1889_v57 }
 0xe39   :  { %3594 = vmatpush3.bf16.msra.mxu0 %v4117_v35  ;;  %3600 = vmatpush3.bf16.msra.mxu1 %v4119_v39 }
 0xe3a   :  { %3595 = vmatprep.subr.bf16.mxu0 %v3937_v0  ;;  %3384 = vmatprep.mubr.msk.f32.mxu0 %vm3938_vm1, %v3939_v1 }
 0xe3b   :  { %3601 = vmatprep.subr.bf16.mxu1 %v3937_v0  ;;  %3395 = vmatprep.mubr.msk.f32.mxu1 %vm3938_vm1, %v3939_v1 }
 0xe3d   :  { %3597 = vmatpush3.bf16.msra.mxu0 %v4122_v42  ;;  %3603 = vmatpush3.bf16.msra.mxu1 %v4126_v43 }
 0xe3e   :  { %3604 = vmatprep.subr.bf16.mxu0 %v3937_v0  ;;  %3610 = vmatprep.subr.bf16.mxu1 %v3937_v0 }
 0xf03   :  { %v1778_v58 = vpop.f32.mrb[18].mxu1 }
 0xf04   :  { %v3346_v59 = vpop.f32.mrb[19].mxu1 }
 0xf07   :  { %v1853_v60 = vpop.f32.mrb[18].mxu0 }
 0xf08   :  { %v1854_v61 = vadd.f32 %v1853_v60, %v1778_v58  ;;  %v3357_v62 = vpop.f32.mrb[19].mxu0 }
 0xf0a   :  { %v1857_v63 = vadd.f32 %v4164_v52, %v1854_v61 }
 0xf0b   :  { %v1956_v2 = vpop.f32.mrb[20].mxu1  ;;  %v2029_v3 = vpop.f32.mrb[20].mxu0 }
 0xf0c   :  { %3732 = vtanh.f32 %v1857_v63  ;;  %v3368_v4 = vpop.f32.mrb[21].mxu1  ;;  %v2030_v6 = vadd.f32 %v2029_v3, %v1956_v2  ;;  %v3375_v7 = vpop.f32.mrb[21].mxu0  ;;  %v2995_v13 = vmul.f32 -1.442695, %v1857_v63 }
 0xf0e   :  { %v2033_v8 = vadd.f32 %v4108_v15, %v2030_v6 }
 0xf10   :  { %3734 = vtanh.f32 %v2033_v8  ;;  %v2998_v14 = vmul.f32 -1.442695, %v2033_v8 }
 0xf11   :  { %3736 = vpow2.f32 %v2995_v13 }
 0xf12   :  { %3738 = vpow2.f32 %v2998_v14 }
 0xf16   :  { %v3733_v11 = vpop.eup %3732 }
 0xf17   :  { %1867 = vrot.lane.b32.xlu0 %v3733_v11, %s3940_s27 }
 0xf1a   :  { %v3735_v12 = vpop.eup %3734 }
 0xf1b   :  { %2043 = vrot.lane.b32.xlu1 %v3735_v12, %s3940_s27  ;;  %v3737_v16 = vpop.eup %3736 }
 0xf1c   :  { %v1861_v17 = vadd.f32 1.0, %v3737_v16  ;;  %v3739_v18 = vpop.eup %3738 }
 0xf1d   :  { %v2037_v19 = vadd.f32 1.0, %v3739_v18 }
 0xf1e   :  { %3740 = vrcp.f32 %v1861_v17 }
 0xf1f   :  { %3742 = vrcp.f32 %v2037_v19 }
 0xf28   :  { %v3741_v20 = vpop.eup %3740 }
 0xf29   :  { %v3743_v23 = vpop.eup %3742  ;;  %v1865_v26 = vmul.f32 %v3741_v20, %v4308_v44  ;;  %v2237_v44 = vld [vmem:[#allocation6 + $0x30] sm:$0xff] }
 0xf2a   :  { %v2041_v29 = vmul.f32 %v3743_v23, %v4312_v47 }
 0xf89   :  { %v1868_v21 = vpop.permute.xlu0 %1867 }
 0xf8a   :  { %v1870_v22 = vmul.f32 %v3741_v20, %v1868_v21 }
 0xf8c   :  { %1872 = vrot.lane.b32.xlu0 %v1870_v22, %s3941_s17 }
 0xf8d   :  { %v2044_v24 = vpop.permute.xlu1 %2043 }
 0xf8e   :  { %v2046_v25 = vmul.f32 %v3743_v23, %v2044_v24 }
 0xf90   :  { %2048 = vrot.lane.b32.xlu1 %v2046_v25, %s3941_s17 }
 0xffe   :  { %v1873_v27 = vpop.permute.xlu0 %1872 }
 0xfff   :  { %v4353_v28 = vadd.f32 %v1873_v27, %v1865_v26  ;;  %v2585_v27 = vld [vmem:[#allocation6 + $0x38] sm:$0xff] }
0x1001   :  { %3744 = vtanh.f32 %v4353_v28 }
0x1002   :  { %v2049_v30 = vpop.permute.xlu1 %2048 }
0x1003   :  { %v4357_v32 = vadd.f32 %v2049_v30, %v2041_v29 }
0x1005   :  { %3746 = vtanh.f32 %v4357_v32 }
0x100b   :  { %v3745_v33 = vpop.eup %3744 }
0x100c   :  { %1878 = vrot.lane.b32.xlu0 %v3745_v33, %s3940_s27 }
0x100f   :  { %v3747_v31 = vpop.eup %3746 }
0x1010   :  { %2054 = vrot.lane.b32.xlu1 %v3747_v31, %s3940_s27 }
0x107e   :  { %v1879_v34 = vpop.permute.xlu0 %1878 }
0x107f   :  { %v1881_v36 = vmul.f32 %v3741_v20, %v1879_v34 }
0x1081   :  { %1883 = vrot.lane.b32.xlu0 %v1881_v36, %s3941_s17 }
0x1082   :  { %v2055_v37 = vpop.permute.xlu1 %2054 }
0x1083   :  { %v2057_v38 = vmul.f32 %v3743_v23, %v2055_v37 }
0x1085   :  { %2131 = vrot.lane.b32.xlu1 %v2057_v38, %s3941_s17 }
0x10f3   :  { %v1884_v40 = vpop.permute.xlu0 %1883 }
0x10f4   :  { %1887 = vst.msk [vmem:[#allocation15 + $0x20] sm:$0xff] %vm99_vm0, %v1884_v40  ;;  %3385 = vmatmul.mubr.msk.f32.vlgmr.msra.gmra.mrb[22].mxu0 %vm99_vm0, %v1884_v40 }
0x10f5   :  { %3606 = vmatpush3.bf16.msra.mxu0 %v4087_v5  ;;  %3406 = vmatprep.mubr.msk.f32.mxu0 %vm3938_vm1, %v3939_v1 }
0x10f6   :  { %3607 = vmatprep.subr.bf16.mxu0 %v3937_v0 }
0x10f7   :  { %v2132_v41 = vpop.permute.xlu1 %2131 }
0x10f8   :  { %3396 = vmatmul.mubr.msk.f32.vlgmr.msra.gmra.mrb[22].mxu1 %vm99_vm0, %v2132_v41 }
0x10f9   :  { %3609 = vmatpush3.bf16.msra.mxu0 %v4092_v10  ;;  %3612 = vmatpush3.bf16.msra.mxu1 %v4089_v9 }
0x10fa   :  { %3413 = vmatprep.mubr.msk.f32.mxu1 %vm3938_vm1, %v3939_v1  ;;  %3613 = vmatprep.subr.bf16.mxu1 %v3937_v0 }
0x10fb   :  { %3619 = vmatprep.subr.bf16.mxu0 %v3937_v0 }
0x10fc   :  { %3407 = vmatmul.mubr.msk.f32.vlgmr.msra.gmra.mrb[24].mxu0 %vm99_vm0, %v2132_v41  ;;  %3414 = vmatmul.mubr.msk.f32.vlgmr.msra.gmra.mrb[24].mxu1 %vm199_vm2, %v2237_v44 }
0x10fd   :  { %3615 = vmatpush3.bf16.msra.mxu1 %v4117_v35  ;;  %3621 = vmatpush3.bf16.msra.mxu0 %v4119_v39 }
0x10fe   :  { %3616 = vmatprep.subr.bf16.mxu1 %v3937_v0  ;;  %3424 = vmatprep.mubr.msk.f32.mxu1 %vm3938_vm1, %v3939_v1 }
0x10ff   :  { %3622 = vmatprep.subr.bf16.mxu0 %v3937_v0  ;;  %3435 = vmatprep.mubr.msk.f32.mxu0 %vm3938_vm1, %v3939_v1 }
0x1101   :  { %3618 = vmatpush3.bf16.msra.mxu1 %v4122_v42  ;;  %3624 = vmatpush3.bf16.msra.mxu0 %v4126_v43 }
0x1102   :  { %3625 = vmatprep.subr.bf16.mxu1 %v3937_v0  ;;  %3631 = vmatprep.subr.bf16.mxu0 %v3937_v0 }
0x11c7   :  { %v2126_v45 = vpop.f32.mrb[22].mxu0 }
0x11c8   :  { %v3386_v46 = vpop.f32.mrb[23].mxu0 }
0x11cb   :  { %v2201_v47 = vpop.f32.mrb[22].mxu1 }
0x11cc   :  { %v2202_v48 = vadd.f32 %v2201_v47, %v2126_v45  ;;  %v3397_v49 = vpop.f32.mrb[23].mxu1 }
0x11ce   :  { %v2205_v50 = vadd.f32 %v4164_v52, %v2202_v48 }
0x11cf   :  { %v2304_v51 = vpop.f32.mrb[24].mxu0  ;;  %v2377_v53 = vpop.f32.mrb[24].mxu1 }
0x11d0   :  { %3748 = vtanh.f32 %v2205_v50  ;;  %v3408_v54 = vpop.f32.mrb[25].mxu0  ;;  %v2378_v55 = vadd.f32 %v2377_v53, %v2304_v51  ;;  %v3415_v56 = vpop.f32.mrb[25].mxu1  ;;  %v3001_v60 = vmul.f32 -1.442695, %v2205_v50 }
0x11d2   :  { %v2381_v57 = vadd.f32 %v4108_v15, %v2378_v55 }
0x11d4   :  { %3750 = vtanh.f32 %v2381_v57  ;;  %v3004_v61 = vmul.f32 -1.442695, %v2381_v57 }
0x11d5   :  { %3752 = vpow2.f32 %v3001_v60 }
0x11d6   :  { %3754 = vpow2.f32 %v3004_v61 }
0x11da   :  { %v3749_v58 = vpop.eup %3748 }
0x11db   :  { %2215 = vrot.lane.b32.xlu0 %v3749_v58, %s3940_s27 }
0x11de   :  { %v3751_v59 = vpop.eup %3750 }
0x11df   :  { %2391 = vrot.lane.b32.xlu1 %v3751_v59, %s3940_s27  ;;  %v3753_v62 = vpop.eup %3752 }
0x11e0   :  { %v2209_v63 = vadd.f32 1.0, %v3753_v62  ;;  %v3755_v2 = vpop.eup %3754 }
0x11e1   :  { %v2385_v3 = vadd.f32 1.0, %v3755_v2 }
0x11e2   :  { %3756 = vrcp.f32 %v2209_v63 }
0x11e3   :  { %3758 = vrcp.f32 %v2385_v3 }
0x11ec   :  { %v3757_v4 = vpop.eup %3756 }
0x11ed   :  { %v3759_v7 = vpop.eup %3758  ;;  %v2213_v12 = vmul.f32 %v3757_v4, %v4353_v28 }
0x11ee   :  { %v2389_v16 = vmul.f32 %v3759_v7, %v4357_v32 }
0x124d   :  { %v2216_v6 = vpop.permute.xlu0 %2215 }
0x124e   :  { %v2218_v15 = vmul.f32 %v3757_v4, %v2216_v6 }
0x1250   :  { %2220 = vrot.lane.b32.xlu0 %v2218_v15, %s3941_s17 }
0x1251   :  { %v2392_v8 = vpop.permute.xlu1 %2391 }
0x1252   :  { %v2394_v11 = vmul.f32 %v3759_v7, %v2392_v8 }
0x1254   :  { %2396 = vrot.lane.b32.xlu1 %v2394_v11, %s3941_s17 }
0x12c2   :  { %v2221_v13 = vpop.permute.xlu0 %2220 }
0x12c3   :  { %v4398_v14 = vadd.f32 %v2221_v13, %v2213_v12 }
0x12c5   :  { %3760 = vtanh.f32 %v4398_v14 }
0x12c6   :  { %v2397_v17 = vpop.permute.xlu1 %2396 }
0x12c7   :  { %v4402_v18 = vadd.f32 %v2397_v17, %v2389_v16 }
0x12c9   :  { %3762 = vtanh.f32 %v4402_v18 }
0x12cf   :  { %v3761_v19 = vpop.eup %3760 }
0x12d0   :  { %2226 = vrot.lane.b32.xlu0 %v3761_v19, %s3940_s27 }
0x12d3   :  { %v3763_v20 = vpop.eup %3762 }
0x12d4   :  { %2402 = vrot.lane.b32.xlu1 %v3763_v20, %s3940_s27 }
0x1342   :  { %v2227_v21 = vpop.permute.xlu0 %2226 }
0x1343   :  { %v2229_v22 = vmul.f32 %v3757_v4, %v2227_v21 }
0x1345   :  { %2231 = vrot.lane.b32.xlu0 %v2229_v22, %s3941_s17 }
0x1346   :  { %v2403_v23 = vpop.permute.xlu1 %2402 }
0x1347   :  { %v2405_v24 = vmul.f32 %v3759_v7, %v2403_v23  ;;  %v3789_v7 = vld [vmem:[%s4484_s6] ss:$0 sm:$0xff]  ;;  %s3942_s6 = smov 96  }
0x1349   :  { %2479 = vrot.lane.b32.xlu1 %v2405_v24, %s3941_s17 }
0x13b7   :  { %v2232_v25 = vpop.permute.xlu0 %2231 }
0x13b8   :  { %2235 = vst.msk [vmem:[#allocation15 + $0x28] sm:$0xff] %vm99_vm0, %v2232_v25  ;;  %3425 = vmatmul.mubr.msk.f32.vlgmr.msra.gmra.mrb[26].mxu1 %vm99_vm0, %v2232_v25 }
0x13b9   :  { %3627 = vmatpush3.bf16.msra.mxu1 %v4087_v5  ;;  %3446 = vmatprep.mubr.msk.f32.mxu1 %vm3938_vm1, %v3939_v1 }
0x13ba   :  { %3628 = vmatprep.subr.bf16.mxu1 %v3937_v0 }
0x13bb   :  { %v2480_v26 = vpop.permute.xlu1 %2479 }
0x13bc   :  { %3436 = vmatmul.mubr.msk.f32.vlgmr.msra.gmra.mrb[26].mxu0 %vm99_vm0, %v2480_v26 }
0x13bd   :  { %3630 = vmatpush3.bf16.msra.mxu1 %v4092_v10  ;;  %3633 = vmatpush3.bf16.msra.mxu0 %v4089_v9 }
0x13be   :  { %3453 = vmatprep.mubr.msk.f32.mxu0 %vm3938_vm1, %v3939_v1  ;;  %3634 = vmatprep.subr.bf16.mxu0 %v3937_v0 }
0x13bf   :  { %3640 = vmatprep.subr.bf16.mxu1 %v3937_v0 }
0x13c0   :  { %3447 = vmatmul.mubr.msk.f32.vlgmr.msra.gmra.mrb[28].mxu1 %vm99_vm0, %v2480_v26  ;;  %3454 = vmatmul.mubr.msk.f32.vlgmr.msra.gmra.mrb[28].mxu0 %vm199_vm2, %v2585_v27 }
0x13c1   :  { %3636 = vmatpush3.bf16.msra.mxu0 %v4117_v35  ;;  %3642 = vmatpush3.bf16.msra.mxu1 %v4119_v39 }
0x13c2   :  { %3637 = vmatprep.subr.bf16.mxu0 %v3937_v0  ;;  %3464 = vmatprep.mubr.msk.f32.mxu0 %vm3938_vm1, %v3939_v1 }
0x13c3   :  { %3643 = vmatprep.subr.bf16.mxu1 %v3937_v0  ;;  %3475 = vmatprep.mubr.msk.f32.mxu1 %vm3938_vm1, %v3939_v1  ;;  %v3788_v1 = vld [vmem:[%s4481_s3] ss:$0 sm:$0xff] }
0x13c5   :  { %3639 = vmatpush3.bf16.msra.mxu0 %v4122_v42  ;;  %3645 = vmatpush3.bf16.msra.mxu1 %v4126_v43 }
0x148b   :  { %v2474_v5 = vpop.f32.mrb[26].mxu1 }
0x148c   :  { %v3426_v9 = vpop.f32.mrb[27].mxu1 }
0x148f   :  { %v2549_v10 = vpop.f32.mrb[26].mxu0 }
0x1490   :  { %v2550_v35 = vadd.f32 %v2549_v10, %v2474_v5  ;;  %v3437_v28 = vpop.f32.mrb[27].mxu0 }
0x1492   :  { %v2553_v39 = vadd.f32 %v4164_v52, %v2550_v35 }
0x1493   :  { %v2652_v29 = vpop.f32.mrb[28].mxu1  ;;  %v2725_v30 = vpop.f32.mrb[28].mxu0 }
0x1494   :  { %3764 = vtanh.f32 %v2553_v39  ;;  %v3448_v32 = vpop.f32.mrb[29].mxu1  ;;  %v2726_v33 = vadd.f32 %v2725_v30, %v2652_v29  ;;  %v3455_v0 = vpop.f32.mrb[29].mxu0  ;;  %v3007_v34 = vmul.f32 -1.442695, %v2553_v39 }
0x1496   :  { %v2729_v42 = vadd.f32 %v3788_v1, %v2726_v33 }
0x1498   :  { %3766 = vtanh.f32 %v2729_v42  ;;  %v3010_v52 = vmul.f32 -1.442695, %v2729_v42 }
0x1499   :  { %3768 = vpow2.f32 %v3007_v34 }
0x149a   :  { %3770 = vpow2.f32 %v3010_v52 }
0x149e   :  { %v3765_v43 = vpop.eup %3764 }
0x149f   :  { %2563 = vrot.lane.b32.xlu0 %v3765_v43, %s3940_s27 }
0x14a2   :  { %v3767_v31 = vpop.eup %3766 }
0x14a3   :  { %2739 = vrot.lane.b32.xlu1 %v3767_v31, %s3940_s27  ;;  %v3769_v36 = vpop.eup %3768 }
0x14a4   :  { %v2557_v37 = vadd.f32 1.0, %v3769_v36  ;;  %v3771_v38 = vpop.eup %3770 }
0x14a5   :  { %v2733_v40 = vadd.f32 1.0, %v3771_v38 }
0x14a6   :  { %3772 = vrcp.f32 %v2557_v37 }
0x14a7   :  { %3774 = vrcp.f32 %v2733_v40 }
0x14b0   :  { %v3773_v41 = vpop.eup %3772 }
0x14b1   :  { %v3775_v46 = vpop.eup %3774  ;;  %v2561_v49 = vmul.f32 %v3773_v41, %v4398_v14 }
0x14b2   :  { %v2737_v53 = vmul.f32 %v3775_v46, %v4402_v18 }
0x1511   :  { %v2564_v44 = vpop.permute.xlu0 %2563 }
0x1512   :  { %v2566_v45 = vmul.f32 %v3773_v41, %v2564_v44 }
0x1514   :  { %2568 = vrot.lane.b32.xlu0 %v2566_v45, %s3941_s17 }
0x1515   :  { %v2740_v47 = vpop.permute.xlu1 %2739 }
0x1516   :  { %v2742_v48 = vmul.f32 %v3775_v46, %v2740_v47 }
0x1518   :  { %2744 = vrot.lane.b32.xlu1 %v2742_v48, %s3941_s17 }
0x1586   :  { %v2569_v50 = vpop.permute.xlu0 %2568 }
0x1587   :  { %v2571_v51 = vadd.f32 %v2569_v50, %v2561_v49 }
0x1589   :  { %3776 = vtanh.f32 %v2571_v51 }
0x158a   :  { %v2745_v54 = vpop.permute.xlu1 %2744 }
0x158b   :  { %v2747_v55 = vadd.f32 %v2745_v54, %v2737_v53 }
0x158d   :  { %3778 = vtanh.f32 %v2747_v55 }
0x1593   :  { %v3777_v56 = vpop.eup %3776 }
0x1594   :  { %2574 = vrot.lane.b32.xlu0 %v3777_v56, %s3940_s27 }
0x1597   :  { %v3779_v57 = vpop.eup %3778 }
0x1598   :  { %2750 = vrot.lane.b32.xlu1 %v3779_v57, %s3940_s27 }
0x1606   :  { %v2575_v58 = vpop.permute.xlu0 %2574 }
0x1607   :  { %v2577_v59 = vmul.f32 %v3773_v41, %v2575_v58 }
0x1609   :  { %2579 = vrot.lane.b32.xlu0 %v2577_v59, %s3941_s17 }
0x160a   :  { %v2751_v60 = vpop.permute.xlu1 %2750 }
0x160b   :  { %v2753_v61 = vmul.f32 %v3775_v46, %v2751_v60 }
0x160d   :  { %2827 = vrot.lane.b32.xlu1 %v2753_v61, %s3941_s17 }
0x167b   :  { %v2580_v62 = vpop.permute.xlu0 %2579 }
0x167c   :  { %2583 = vst.msk [vmem:[#allocation15 + $0x30] sm:$0xff] %vm99_vm0, %v2580_v62  ;;  %3465 = vmatmul.mubr.msk.f32.vlgmr.msra.gmra.mrb[30].mxu0 %vm99_vm0, %v2580_v62 }
0x167f   :  { %v2828_v63 = vpop.permute.xlu1 %2827 }
0x1680   :  { %2933 = vst.msk [vmem:[#allocation2] sm:$0xff] %vm99_vm0, %v2828_v63  ;;  %3476 = vmatmul.mubr.msk.f32.vlgmr.msra.gmra.mrb[30].mxu1 %vm99_vm0, %v2828_v63 }
0x174f   :  { %v2822_v2 = vpop.f32.mrb[30].mxu0 }
0x1750   :  { %v3466_v3 = vpop.f32.mrb[31].mxu0 }
0x1753   :  { %v2897_v4 = vpop.f32.mrb[30].mxu1 }
0x1754   :  { %v2898_v6 = vadd.f32 %v2897_v4, %v2822_v2  ;;  %v3477_v15 = vpop.f32.mrb[31].mxu1 }
0x1756   :  { %v2901_v8 = vadd.f32 %v3789_v7, %v2898_v6 }
0x1758   :  { %3780 = vtanh.f32 %v2901_v8  ;;  %v3013_v12 = vmul.f32 -1.442695, %v2901_v8 }
0x175a   :  { %3782 = vpow2.f32 %v3013_v12 }
0x1762   :  { %v3781_v11 = vpop.eup %3780 }
0x1763   :  { %2911 = vrot.lane.b32.xlu0 %v3781_v11, %s3940_s27 }
0x1764   :  { %v3783_v13 = vpop.eup %3782 }
0x1765   :  { %v2905_v14 = vadd.f32 1.0, %v3783_v13 }
0x1767   :  { %3784 = vrcp.f32 %v2905_v14 }
0x1771   :  { %v3785_v16 = vpop.eup %3784 }
0x1772   :  { %v2909_v19 = vmul.f32 %v3785_v16, %v2571_v51 }
0x17d5   :  { %v2912_v17 = vpop.permute.xlu0 %2911 }
0x17d6   :  { %v2914_v18 = vmul.f32 %v3785_v16, %v2912_v17 }
0x17d8   :  { %2916 = vrot.lane.b32.xlu1 %v2914_v18, %s3941_s17 }
0x184a   :  { %v2917_v20 = vpop.permute.xlu1 %2916 }
0x184b   :  { %v2919_v21 = vadd.f32 %v2917_v20, %v2909_v19 }
0x184d   :  { %3786 = vtanh.f32 %v2919_v21 }
0x1857   :  { %v3787_v22 = vpop.eup %3786 }
0x1858   :  { %2922 = vrot.lane.b32.xlu0 %v3787_v22, %s3940_s27 }
0x185c   :  { %2935 = vrot.lane.b32.xlu0 %v2747_v55, %s3942_s6 }
0x18ca   :  { %v2923_v23 = vpop.permute.xlu0 %2922 }
0x18cb   :  { %v2925_v24 = vmul.f32 %v3785_v16, %v2923_v23 }
0x18cd   :  { %2927 = vrot.lane.b32.xlu1 %v2925_v24, %s3941_s17 }
0x18ce   :  { %v2936_v25 = vpop.permute.xlu0 %2935 }
0x18cf   :  { %2938 = vst.msk [vmem:[#allocation3] sm:$0xff] %vm99_vm0, %v2936_v25 }
0x18d1   :  { %2941 = vrot.lane.b32.xlu1 %v2919_v21, %s3942_s6 }
0x193f   :  { %v2928_v26 = vpop.permute.xlu1 %2927 }
0x1940   :  { %2931 = vst.msk [vmem:[#allocation15 + $0x38] sm:$0xff] %vm99_vm0, %v2928_v26  ;;  %2939 = vst.msk [vmem:[#allocation4] sm:$0xff] %vm99_vm0, %v2928_v26 }
0x1941   :  { %3911 = shalt.err (!%p3908_p2)
}
0x1942   :  { %s3912_s26 = scalar_lea.hbm %s4485_s7, 1024 }
0x1943   :  { %p3913_p3 = scmp.ne.s32.totalorder %s4485_s7, %s3912_s26  ;;  %p3916_p4 = scmp.lt.u32.totalorder %s3912_s26, %s4485_s7 }
0x1945   :  { %p3918_p5 = pnand %p3916_p4, %p3913_p3 }
0x1947   :  { %3921 = shalt.err (!%p3918_p5)
}
0x1948   :  { %2956 = dma.vmem_to_hbm [thread:$0]  %s2951_s24, 1024, %s4485_s7, [#allocation8], %s3932_s13, %s3932_s13, %s3933_s14   ;;  %v2942_v27 = vpop.permute.xlu1 %2941 }
0x1949   :  { %2944 = vst.msk [vmem:[#allocation5] sm:$0xff] %vm99_vm0, %v2942_v27 }
0x194a   :  { %3928 = dma.done.wait [#allocation8], 1024  }
0x194b   :  { %3929 = vsyncadd [#allocation8], 4294966272 }
0x194c   :  { %2960 = vsyncpa [#allocation7], 1 }
0x194d   :  { %2961 = vsyncpa [#allocation10], 1 }
0x194e   :  { %2962 = vsyncpa [#allocation13], 1 }
0x194f   :  { %2963 = vsyncpa [#allocation8], 1 }

</bundles_post_ra>
